<compile_context>
chip_gen: v6e
topology: v6e:2x2x1
jax: 0.10.0
libtpu: 0.0.40
codegen_flags: <defaults>
</compile_context>

<pallas_src>
import functools
import math

import jax
import jax.numpy as jnp
from jax.experimental import pallas as pl
from jax.experimental.pallas import tpu as pltpu


# ----------------------------- fused Pallas kernel ---------------------------

def _fused_forward_kernel(n_heads, eps,
                          x_ref, wi_ref, bi_ref,
                          wqkv_ref, wo_ref, g1_ref, be1_ref,
                          w1_ref, b1_ref, w2_ref, b2_ref, g2_ref, be2_ref,
                          node_ref, graph_ref, agent_ref,
                          o_scr):
    """Whole encoder forward in a single kernel invocation (no grid)."""
    B, N, E = node_ref.shape
    H = n_heads
    D = E // H
    L = wqkv_ref.shape[0]
    scale = 1.0 / math.sqrt(D)

    # ---- initial node embedding (bf16 MXU operands, f32 accumulation) ----
    h0 = (jnp.einsum("bnd,de->bne", x_ref[...].astype(jnp.bfloat16), wi_ref[...],
                     preferred_element_type=jnp.float32)
          + bi_ref[...])                                        # (B, N, E) f32

    def layer_body(l, h):
        # ---- multi-head self attention ----
        h_b = h.astype(jnp.bfloat16)
        # fused QKV projection: one lane-dense (E, 3E) matmul
        qkv = jnp.einsum("bne,ef->bnf", h_b, wqkv_ref[l],
                         preferred_element_type=jnp.float32)    # (B, N, 3E)
        qkv_b = qkv.astype(jnp.bfloat16)

        # Per head: scores, softmax, P @ V.  Each head's output goes into a
        # static lane-contiguous slot of o_scr so the output projection runs
        # ONCE with a K=E contraction (instead of H K=D matmuls).
        for hd in range(H):                                     # static unroll
            lo = hd * D
            qh = qkv_b[:, :, lo:lo + D]
            kh = qkv_b[:, :, E + lo:E + lo + D]
            vh = qkv_b[:, :, 2 * E + lo:2 * E + lo + D]
            s = jnp.einsum("bnd,bmd->bnm", qh, kh,
                           preferred_element_type=jnp.float32) * scale
            s = s - jnp.max(s, axis=-1, keepdims=True)
            p = jnp.exp(s)
            p = p / jnp.sum(p, axis=-1, keepdims=True)          # exact division
            oh = jnp.einsum("bnm,bmd->bnd", p.astype(jnp.bfloat16), vh,
                            preferred_element_type=jnp.float32)  # (B, N, D)
            o_scr[:, :, lo:lo + D] = oh

        # single output projection, K = E
        mha = jnp.einsum("bne,ef->bnf", o_scr[...].astype(jnp.bfloat16),
                         wo_ref[l], preferred_element_type=jnp.float32)

        # ---- residual + batch-norm (two-pass variance, training-mode stats) ----
        h1 = h + mha
        mu1 = jnp.mean(h1, axis=(0, 1), keepdims=True)
        d1 = h1 - mu1
        var1 = jnp.mean(d1 * d1, axis=(0, 1), keepdims=True)
        h1n = d1 * jax.lax.rsqrt(var1 + eps) * g1_ref[l] + be1_ref[l]

        # ---- feed-forward ----
        f = jnp.einsum("bne,ef->bnf", h1n.astype(jnp.bfloat16), w1_ref[l],
                       preferred_element_type=jnp.float32) + b1_ref[l]
        f = jnp.maximum(f, 0.0)
        f = jnp.einsum("bnf,fe->bne", f.astype(jnp.bfloat16), w2_ref[l],
                       preferred_element_type=jnp.float32) + b2_ref[l]

        # ---- residual + batch-norm ----
        h2 = h1n + f
        mu2 = jnp.mean(h2, axis=(0, 1), keepdims=True)
        d2 = h2 - mu2
        var2 = jnp.mean(d2 * d2, axis=(0, 1), keepdims=True)
        h2n = d2 * jax.lax.rsqrt(var2 + eps) * g2_ref[l] + be2_ref[l]
        return h2n

    h = jax.lax.fori_loop(0, L, layer_body, h0)

    # ---- fused readout ----
    node_ref[...] = h
    graph_ref[...] = jnp.mean(h, axis=1)                        # (B, E)
    agent_ref[...] = jnp.broadcast_to(h[:, 0:1, :], agent_ref.shape)


# ------------------------------- wrapper --------------------------------------

def attention_mtsp_forward(x, params, *, n_heads, n_agents):
    """Returns (node_embedding, graph_embedding, agent_embedding, step_context)."""
    B, N, node_dim = x.shape
    E = params["wo"].shape[1]
    L = params["wqkv"].shape[0]
    F = params["w1"].shape[2]
    assert E % n_heads == 0

    # rough cost hint for the XLA scheduler
    flops_layer = (2 * B * N * E * (3 * E)        # fused QKV
                   + 2 * B * N * N * E            # scores (all heads)
                   + 2 * B * N * N * E            # P @ V  (all heads)
                   + 2 * B * N * E * E            # output projection
                   + 2 * B * N * E * F            # FF up
                   + 2 * B * N * F * E)           # FF down
    flops = L * flops_layer + 2 * B * N * node_dim * E
    transcendentals = L * (B * n_heads * N * N + 2 * E)
    inputs = (x, params["w_init"], params["b_init"],
              params["wqkv"], params["wo"], params["g1"], params["be1"],
              params["w1"], params["b1"], params["w2"], params["b2"],
              params["g2"], params["be2"])
    out_bytes = 4 * (B * N * E + B * E + B * n_agents * E)
    bytes_accessed = int(
        sum(int(a.size) * a.dtype.itemsize for a in inputs) + out_bytes)

    vmem = lambda: pl.BlockSpec(memory_space=pltpu.MemorySpace.VMEM)
    kernel = functools.partial(_fused_forward_kernel, n_heads, 1e-5)

    node_emb, graph_emb, agent_emb = pl.pallas_call(
        kernel,
        out_shape=(
            jax.ShapeDtypeStruct((B, N, E), jnp.float32),
            jax.ShapeDtypeStruct((B, E), jnp.float32),
            jax.ShapeDtypeStruct((B, n_agents, E), jnp.float32),
        ),
        in_specs=[vmem() for _ in range(13)],
        out_specs=(vmem(), vmem(), vmem()),
        scratch_shapes=[pltpu.VMEM((B, N, E), jnp.float32)],   # head-output assembly
        compiler_params=pltpu.CompilerParams(
            vmem_limit_bytes=32 * 1024 * 1024),
        cost_estimate=pl.CostEstimate(
            flops=int(flops),
            transcendentals=int(transcendentals),
            bytes_accessed=bytes_accessed),
    )(x, params["w_init"], params["b_init"],
      params["wqkv"], params["wo"], params["g1"], params["be1"],
      params["w1"], params["b1"], params["w2"], params["b2"],
      params["g2"], params["be2"])

    # step_context is identically zero — materialize outside the kernel.
    step_ctx = jnp.zeros((B, n_agents, E), jnp.float32)
    return node_emb, graph_emb, agent_emb, step_ctx


# --------------------------- parameter init ----------------------------------

def init_params(key, *, node_dim, n_embed, n_layers, ff_hidden):
    """Initialize AND pre-fuse weights once: QKV concat, per-layer stacking,
    bf16 cast of matmul operands.  Keeps the per-call forward free of weight
    reshuffling in HBM."""
    def uni(k, shape, fan_in):
        bound = 1.0 / math.sqrt(fan_in)
        return jax.random.uniform(k, shape, jnp.float32, -bound, bound)

    keys = jax.random.split(key, 2 + 8 * n_layers)
    ki = iter(keys)

    w_init = uni(next(ki), (node_dim, n_embed), node_dim)
    b_init = uni(next(ki), (1, n_embed), node_dim)

    wqkv, wo, w1, b1, w2, b2 = [], [], [], [], [], []
    for _ in range(n_layers):
        wq = uni(next(ki), (n_embed, n_embed), n_embed)
        wk = uni(next(ki), (n_embed, n_embed), n_embed)
        wv = uni(next(ki), (n_embed, n_embed), n_embed)
        wqkv.append(jnp.concatenate([wq, wk, wv], axis=1))      # (E, 3E)
        wo.append(uni(next(ki), (n_embed, n_embed), n_embed))
        w1.append(uni(next(ki), (n_embed, ff_hidden), n_embed))
        b1.append(uni(next(ki), (1, ff_hidden), n_embed))
        w2.append(uni(next(ki), (ff_hidden, n_embed), ff_hidden))
        b2.append(uni(next(ki), (1, n_embed), ff_hidden))

    L, E = n_layers, n_embed
    return {
        # matmul weights pre-cast to bf16 (MXU-native); biases/BN stay f32.
        "w_init": w_init.astype(jnp.bfloat16),                  # (node_dim, E)
        "b_init": b_init,                                       # (1, E)
        "wqkv": jnp.stack(wqkv).astype(jnp.bfloat16),           # (L, E, 3E)
        "wo": jnp.stack(wo).astype(jnp.bfloat16),               # (L, E, E)
        "w1": jnp.stack(w1).astype(jnp.bfloat16),               # (L, E, F)
        "b1": jnp.stack(b1),                                    # (L, 1, F)
        "w2": jnp.stack(w2).astype(jnp.bfloat16),               # (L, F, E)
        "b2": jnp.stack(b2),                                    # (L, 1, E)
        "g1": jnp.ones((L, 1, E), jnp.float32),
        "be1": jnp.zeros((L, 1, E), jnp.float32),
        "g2": jnp.ones((L, 1, E), jnp.float32),
        "be2": jnp.zeros((L, 1, E), jnp.float32),
    }


# --------------------------------- main ---------------------------------------

if __name__ == "__main__":
    # Small, deterministic config (args.*): graph_size=8, node_dim=2,
    # n_layers=2, n_heads=4, n_embed=32, n_agents=3, normalization='batch'.
    B, N, NODE_DIM = 2, 8, 2
    N_LAYERS, N_HEADS, N_EMBED, N_AGENTS = 2, 4, 32, 3
    FF_HIDDEN = 4 * N_EMBED

    root = jax.random.PRNGKey(0)
    kx, kp = jax.random.split(root)
    x = jax.random.uniform(kx, (B, N, NODE_DIM), jnp.float32)   # node coords
    params = init_params(kp, node_dim=NODE_DIM, n_embed=N_EMBED,
                         n_layers=N_LAYERS, ff_hidden=FF_HIDDEN)

    fwd = jax.jit(functools.partial(attention_mtsp_forward,
                                    n_heads=N_HEADS, n_agents=N_AGENTS))
    node_emb, graph_emb, agent_emb, step_ctx = fwd(x, params)
    jax.block_until_ready((node_emb, graph_emb, agent_emb, step_ctx))

    assert node_emb.shape == (B, N, N_EMBED)
    assert graph_emb.shape == (B, N_EMBED)
    assert agent_emb.shape == (B, N_AGENTS, N_EMBED)
    assert step_ctx.shape == (B, N_AGENTS, N_EMBED)
    # agent_embedding[:, i, :] == node_embedding[:, 0, :] for every agent i
    assert bool(jnp.allclose(agent_emb, node_emb[:, 0:1, :]))
    # graph_embedding == mean over nodes of node_embedding
    assert bool(jnp.allclose(graph_emb, jnp.mean(node_emb, axis=1), atol=1e-5))
    assert bool(jnp.all(step_ctx == 0))
    assert bool(jnp.all(jnp.isfinite(node_emb)))

    print("KERNEL_OK")
</pallas_src>

<mosaic_0001>
module attributes {stable_mosaic.version = 11 : i64} {
  func.func @_fused_forward_kernel(%arg0: memref<2x8x2xf32, #tpu.memory_space<vmem>>, %arg1: memref<2x32xbf16, #tpu.memory_space<vmem>>, %arg2: memref<1x32xf32, #tpu.memory_space<vmem>>, %arg3: memref<2x32x96xbf16, #tpu.memory_space<vmem>>, %arg4: memref<2x32x32xbf16, #tpu.memory_space<vmem>>, %arg5: memref<2x1x32xf32, #tpu.memory_space<vmem>>, %arg6: memref<2x1x32xf32, #tpu.memory_space<vmem>>, %arg7: memref<2x32x128xbf16, #tpu.memory_space<vmem>>, %arg8: memref<2x1x128xf32, #tpu.memory_space<vmem>>, %arg9: memref<2x128x32xbf16, #tpu.memory_space<vmem>>, %arg10: memref<2x1x32xf32, #tpu.memory_space<vmem>>, %arg11: memref<2x1x32xf32, #tpu.memory_space<vmem>>, %arg12: memref<2x1x32xf32, #tpu.memory_space<vmem>>, %arg13: memref<2x8x32xf32, #tpu.memory_space<vmem>>, %arg14: memref<2x32xf32, #tpu.memory_space<vmem>>, %arg15: memref<2x3x32xf32, #tpu.memory_space<vmem>>, %arg16: memref<2x8x32xf32, #tpu.memory_space<vmem>>) attributes {dimension_semantics = [], scalar_prefetch = 0 : i64, scratch_operands = 1 : i64, tpu.core_type = #tpu.core_type<tc>} {
    %c0 = arith.constant 0 : index
    %c0_0 = arith.constant 0 : index
    %c0_1 = arith.constant 0 : index
    %0 = vector.load %arg0[%c0, %c0_0, %c0_1] : memref<2x8x2xf32, #tpu.memory_space<vmem>>, vector<2x8x2xf32>
    %1 = arith.truncf %0 : vector<2x8x2xf32> to vector<2x8x2xbf16>
    %c0_2 = arith.constant 0 : index
    %c0_3 = arith.constant 0 : index
    %2 = vector.load %arg1[%c0_2, %c0_3] : memref<2x32xbf16, #tpu.memory_space<vmem>>, vector<2x32xbf16>
    "tpu.trace_start"() <{level = 10 : i32, message = "bnd,de->bne"}> : () -> ()
    %cst = arith.constant dense<0.000000e+00> : vector<2x8x32xf32>
    %3 = tpu.matmul %1, %2, %cst {dimension_numbers = #tpu.dot_dimension_numbers<[2], [0], [0, 1], [1], [0, 0, 0, 1, 1, 1], [], []>} : vector<2x8x2xbf16>, vector<2x32xbf16>, vector<2x8x32xf32> -> vector<2x8x32xf32>
    "tpu.trace_stop"() : () -> ()
    %c0_4 = arith.constant 0 : index
    %c0_5 = arith.constant 0 : index
    %4 = vector.load %arg2[%c0_4, %c0_5] : memref<1x32xf32, #tpu.memory_space<vmem>>, vector<1x32xf32>
    %5 = vector.shape_cast %4 : vector<1x32xf32> to vector<1x1x32xf32>
    %6 = vector.broadcast %5 : vector<1x1x32xf32> to vector<2x8x32xf32>
    %7 = arith.addf %3, %6 : vector<2x8x32xf32>
    %c0_i32 = arith.constant 0 : i32
    %c2_i32 = arith.constant 2 : i32
    %8 = arith.addi %c0_i32, %c2_i32 : i32
    %c1_i32 = arith.constant 1 : i32
    %9 = scf.for %arg17 = %c0_i32 to %8 step %c1_i32 iter_args(%arg18 = %7) -> (vector<2x8x32xf32>)  : i32 {
      %19 = arith.truncf %arg18 : vector<2x8x32xf32> to vector<2x8x32xbf16>
      %20 = arith.index_cast %arg17 : i32 to index
      %c0_17 = arith.constant 0 : index
      %c0_18 = arith.constant 0 : index
      %21 = vector.load %arg3[%20, %c0_17, %c0_18] : memref<2x32x96xbf16, #tpu.memory_space<vmem>>, vector<1x32x96xbf16>
      %22 = vector.shape_cast %21 : vector<1x32x96xbf16> to vector<32x96xbf16>
      "tpu.trace_start"() <{level = 10 : i32, message = "bne,ef->bnf"}> : () -> ()
      %cst_19 = arith.constant dense<0.000000e+00> : vector<2x8x96xf32>
      %23 = tpu.matmul %19, %22, %cst_19 {dimension_numbers = #tpu.dot_dimension_numbers<[2], [0], [0, 1], [1], [0, 0, 0, 1, 1, 1], [], []>} : vector<2x8x32xbf16>, vector<32x96xbf16>, vector<2x8x96xf32> -> vector<2x8x96xf32>
      "tpu.trace_stop"() : () -> ()
      %24 = arith.truncf %23 : vector<2x8x96xf32> to vector<2x8x96xbf16>
      %25 = vector.extract_strided_slice %24 {offsets = [0, 0, 0], sizes = [2, 8, 8], strides = [1, 1, 1]} : vector<2x8x96xbf16> to vector<2x8x8xbf16>
      %26 = vector.extract_strided_slice %24 {offsets = [0, 0, 32], sizes = [2, 8, 8], strides = [1, 1, 1]} : vector<2x8x96xbf16> to vector<2x8x8xbf16>
      %27 = vector.extract_strided_slice %24 {offsets = [0, 0, 64], sizes = [2, 8, 8], strides = [1, 1, 1]} : vector<2x8x96xbf16> to vector<2x8x8xbf16>
      "tpu.trace_start"() <{level = 10 : i32, message = "bnd,bmd->bnm"}> : () -> ()
      %cst_20 = arith.constant dense<0.000000e+00> : vector<2x8x8xf32>
      %28 = tpu.matmul %25, %26, %cst_20 {dimension_numbers = #tpu.dot_dimension_numbers<[2], [2], [1], [1], [0, 0, 0, 1, 1, 1], [0], [0]>} : vector<2x8x8xbf16>, vector<2x8x8xbf16>, vector<2x8x8xf32> -> vector<2x8x8xf32>
      "tpu.trace_stop"() : () -> ()
      %cst_21 = arith.constant 0.353553385 : f32
      %29 = vector.broadcast %cst_21 : f32 to vector<2x8x8xf32>
      %30 = arith.mulf %28, %29 : vector<2x8x8xf32>
      %cst_22 = arith.constant dense<0xFF800000> : vector<2x8xf32>
      %31 = vector.multi_reduction <maximumf>, %30, %cst_22 [2] : vector<2x8x8xf32> to vector<2x8xf32>
      %32 = vector.shape_cast %31 : vector<2x8xf32> to vector<2x8x1xf32>
      %33 = vector.broadcast %32 : vector<2x8x1xf32> to vector<2x8x8xf32>
      %34 = arith.subf %30, %33 : vector<2x8x8xf32>
      %35 = math.exp %34 : vector<2x8x8xf32>
      %cst_23 = arith.constant dense<0.000000e+00> : vector<2x8xf32>
      %36 = vector.multi_reduction <add>, %35, %cst_23 [2] : vector<2x8x8xf32> to vector<2x8xf32>
      %37 = vector.shape_cast %36 : vector<2x8xf32> to vector<2x8x1xf32>
      %38 = vector.broadcast %37 : vector<2x8x1xf32> to vector<2x8x8xf32>
      %39 = arith.divf %35, %38 : vector<2x8x8xf32>
      %40 = arith.truncf %39 : vector<2x8x8xf32> to vector<2x8x8xbf16>
      "tpu.trace_start"() <{level = 10 : i32, message = "bnm,bmd->bnd"}> : () -> ()
      %cst_24 = arith.constant dense<0.000000e+00> : vector<2x8x8xf32>
      %41 = tpu.matmul %40, %27, %cst_24 {dimension_numbers = #tpu.dot_dimension_numbers<[2], [1], [1], [2], [0, 0, 0, 1, 1, 2], [0], [0]>} : vector<2x8x8xbf16>, vector<2x8x8xbf16>, vector<2x8x8xf32> -> vector<2x8x8xf32>
      "tpu.trace_stop"() : () -> ()
      %c0_25 = arith.constant 0 : index
      %c0_26 = arith.constant 0 : index
      %c0_27 = arith.constant 0 : index
      %42 = vector.load %arg16[%c0_25, %c0_26, %c0_27] : memref<2x8x32xf32, #tpu.memory_space<vmem>>, vector<2x8x8xf32>
      tpu.vector_store %arg16[%c0_25, %c0_26, %c0_27], %41 {strides = array<i32>} : memref<2x8x32xf32, #tpu.memory_space<vmem>>, vector<2x8x8xf32>,
      %43 = vector.extract_strided_slice %24 {offsets = [0, 0, 8], sizes = [2, 8, 8], strides = [1, 1, 1]} : vector<2x8x96xbf16> to vector<2x8x8xbf16>
      %44 = vector.extract_strided_slice %24 {offsets = [0, 0, 40], sizes = [2, 8, 8], strides = [1, 1, 1]} : vector<2x8x96xbf16> to vector<2x8x8xbf16>
      %45 = vector.extract_strided_slice %24 {offsets = [0, 0, 72], sizes = [2, 8, 8], strides = [1, 1, 1]} : vector<2x8x96xbf16> to vector<2x8x8xbf16>
      "tpu.trace_start"() <{level = 10 : i32, message = "bnd,bmd->bnm"}> : () -> ()
      %cst_28 = arith.constant dense<0.000000e+00> : vector<2x8x8xf32>
      %46 = tpu.matmul %43, %44, %cst_28 {dimension_numbers = #tpu.dot_dimension_numbers<[2], [2], [1], [1], [0, 0, 0, 1, 1, 1], [0], [0]>} : vector<2x8x8xbf16>, vector<2x8x8xbf16>, vector<2x8x8xf32> -> vector<2x8x8xf32>
      "tpu.trace_stop"() : () -> ()
      %cst_29 = arith.constant 0.353553385 : f32
      %47 = vector.broadcast %cst_29 : f32 to vector<2x8x8xf32>
      %48 = arith.mulf %46, %47 : vector<2x8x8xf32>
      %cst_30 = arith.constant dense<0xFF800000> : vector<2x8xf32>
      %49 = vector.multi_reduction <maximumf>, %48, %cst_30 [2] : vector<2x8x8xf32> to vector<2x8xf32>
      %50 = vector.shape_cast %49 : vector<2x8xf32> to vector<2x8x1xf32>
      %51 = vector.broadcast %50 : vector<2x8x1xf32> to vector<2x8x8xf32>
      %52 = arith.subf %48, %51 : vector<2x8x8xf32>
      %53 = math.exp %52 : vector<2x8x8xf32>
      %cst_31 = arith.constant dense<0.000000e+00> : vector<2x8xf32>
      %54 = vector.multi_reduction <add>, %53, %cst_31 [2] : vector<2x8x8xf32> to vector<2x8xf32>
      %55 = vector.shape_cast %54 : vector<2x8xf32> to vector<2x8x1xf32>
      %56 = vector.broadcast %55 : vector<2x8x1xf32> to vector<2x8x8xf32>
      %57 = arith.divf %53, %56 : vector<2x8x8xf32>
      %58 = arith.truncf %57 : vector<2x8x8xf32> to vector<2x8x8xbf16>
      "tpu.trace_start"() <{level = 10 : i32, message = "bnm,bmd->bnd"}> : () -> ()
      %cst_32 = arith.constant dense<0.000000e+00> : vector<2x8x8xf32>
      %59 = tpu.matmul %58, %45, %cst_32 {dimension_numbers = #tpu.dot_dimension_numbers<[2], [1], [1], [2], [0, 0, 0, 1, 1, 2], [0], [0]>} : vector<2x8x8xbf16>, vector<2x8x8xbf16>, vector<2x8x8xf32> -> vector<2x8x8xf32>
      "tpu.trace_stop"() : () -> ()
      %c0_33 = arith.constant 0 : index
      %c0_34 = arith.constant 0 : index
      %c8 = arith.constant 8 : index
      %60 = vector.load %arg16[%c0_33, %c0_34, %c8] : memref<2x8x32xf32, #tpu.memory_space<vmem>>, vector<2x8x8xf32>
      tpu.vector_store %arg16[%c0_33, %c0_34, %c8], %59 {strides = array<i32>} : memref<2x8x32xf32, #tpu.memory_space<vmem>>, vector<2x8x8xf32>,
      %61 = vector.extract_strided_slice %24 {offsets = [0, 0, 16], sizes = [2, 8, 8], strides = [1, 1, 1]} : vector<2x8x96xbf16> to vector<2x8x8xbf16>
      %62 = vector.extract_strided_slice %24 {offsets = [0, 0, 48], sizes = [2, 8, 8], strides = [1, 1, 1]} : vector<2x8x96xbf16> to vector<2x8x8xbf16>
      %63 = vector.extract_strided_slice %24 {offsets = [0, 0, 80], sizes = [2, 8, 8], strides = [1, 1, 1]} : vector<2x8x96xbf16> to vector<2x8x8xbf16>
      "tpu.trace_start"() <{level = 10 : i32, message = "bnd,bmd->bnm"}> : () -> ()
      %cst_35 = arith.constant dense<0.000000e+00> : vector<2x8x8xf32>
      %64 = tpu.matmul %61, %62, %cst_35 {dimension_numbers = #tpu.dot_dimension_numbers<[2], [2], [1], [1], [0, 0, 0, 1, 1, 1], [0], [0]>} : vector<2x8x8xbf16>, vector<2x8x8xbf16>, vector<2x8x8xf32> -> vector<2x8x8xf32>
      "tpu.trace_stop"() : () -> ()
      %cst_36 = arith.constant 0.353553385 : f32
      %65 = vector.broadcast %cst_36 : f32 to vector<2x8x8xf32>
      %66 = arith.mulf %64, %65 : vector<2x8x8xf32>
      %cst_37 = arith.constant dense<0xFF800000> : vector<2x8xf32>
      %67 = vector.multi_reduction <maximumf>, %66, %cst_37 [2] : vector<2x8x8xf32> to vector<2x8xf32>
      %68 = vector.shape_cast %67 : vector<2x8xf32> to vector<2x8x1xf32>
      %69 = vector.broadcast %68 : vector<2x8x1xf32> to vector<2x8x8xf32>
      %70 = arith.subf %66, %69 : vector<2x8x8xf32>
      %71 = math.exp %70 : vector<2x8x8xf32>
      %cst_38 = arith.constant dense<0.000000e+00> : vector<2x8xf32>
      %72 = vector.multi_reduction <add>, %71, %cst_38 [2] : vector<2x8x8xf32> to vector<2x8xf32>
      %73 = vector.shape_cast %72 : vector<2x8xf32> to vector<2x8x1xf32>
      %74 = vector.broadcast %73 : vector<2x8x1xf32> to vector<2x8x8xf32>
      %75 = arith.divf %71, %74 : vector<2x8x8xf32>
      %76 = arith.truncf %75 : vector<2x8x8xf32> to vector<2x8x8xbf16>
      "tpu.trace_start"() <{level = 10 : i32, message = "bnm,bmd->bnd"}> : () -> ()
      %cst_39 = arith.constant dense<0.000000e+00> : vector<2x8x8xf32>
      %77 = tpu.matmul %76, %63, %cst_39 {dimension_numbers = #tpu.dot_dimension_numbers<[2], [1], [1], [2], [0, 0, 0, 1, 1, 2], [0], [0]>} : vector<2x8x8xbf16>, vector<2x8x8xbf16>, vector<2x8x8xf32> -> vector<2x8x8xf32>
      "tpu.trace_stop"() : () -> ()
      %c0_40 = arith.constant 0 : index
      %c0_41 = arith.constant 0 : index
      %c16 = arith.constant 16 : index
      %78 = vector.load %arg16[%c0_40, %c0_41, %c16] : memref<2x8x32xf32, #tpu.memory_space<vmem>>, vector<2x8x8xf32>
      tpu.vector_store %arg16[%c0_40, %c0_41, %c16], %77 {strides = array<i32>} : memref<2x8x32xf32, #tpu.memory_space<vmem>>, vector<2x8x8xf32>,
      %79 = vector.extract_strided_slice %24 {offsets = [0, 0, 24], sizes = [2, 8, 8], strides = [1, 1, 1]} : vector<2x8x96xbf16> to vector<2x8x8xbf16>
      %80 = vector.extract_strided_slice %24 {offsets = [0, 0, 56], sizes = [2, 8, 8], strides = [1, 1, 1]} : vector<2x8x96xbf16> to vector<2x8x8xbf16>
      %81 = vector.extract_strided_slice %24 {offsets = [0, 0, 88], sizes = [2, 8, 8], strides = [1, 1, 1]} : vector<2x8x96xbf16> to vector<2x8x8xbf16>
      "tpu.trace_start"() <{level = 10 : i32, message = "bnd,bmd->bnm"}> : () -> ()
      %cst_42 = arith.constant dense<0.000000e+00> : vector<2x8x8xf32>
      %82 = tpu.matmul %79, %80, %cst_42 {dimension_numbers = #tpu.dot_dimension_numbers<[2], [2], [1], [1], [0, 0, 0, 1, 1, 1], [0], [0]>} : vector<2x8x8xbf16>, vector<2x8x8xbf16>, vector<2x8x8xf32> -> vector<2x8x8xf32>
      "tpu.trace_stop"() : () -> ()
      %cst_43 = arith.constant 0.353553385 : f32
      %83 = vector.broadcast %cst_43 : f32 to vector<2x8x8xf32>
      %84 = arith.mulf %82, %83 : vector<2x8x8xf32>
      %cst_44 = arith.constant dense<0xFF800000> : vector<2x8xf32>
      %85 = vector.multi_reduction <maximumf>, %84, %cst_44 [2] : vector<2x8x8xf32> to vector<2x8xf32>
      %86 = vector.shape_cast %85 : vector<2x8xf32> to vector<2x8x1xf32>
      %87 = vector.broadcast %86 : vector<2x8x1xf32> to vector<2x8x8xf32>
      %88 = arith.subf %84, %87 : vector<2x8x8xf32>
      %89 = math.exp %88 : vector<2x8x8xf32>
      %cst_45 = arith.constant dense<0.000000e+00> : vector<2x8xf32>
      %90 = vector.multi_reduction <add>, %89, %cst_45 [2] : vector<2x8x8xf32> to vector<2x8xf32>
      %91 = vector.shape_cast %90 : vector<2x8xf32> to vector<2x8x1xf32>
      %92 = vector.broadcast %91 : vector<2x8x1xf32> to vector<2x8x8xf32>
      %93 = arith.divf %89, %92 : vector<2x8x8xf32>
      %94 = arith.truncf %93 : vector<2x8x8xf32> to vector<2x8x8xbf16>
      "tpu.trace_start"() <{level = 10 : i32, message = "bnm,bmd->bnd"}> : () -> ()
      %cst_46 = arith.constant dense<0.000000e+00> : vector<2x8x8xf32>
      %95 = tpu.matmul %94, %81, %cst_46 {dimension_numbers = #tpu.dot_dimension_numbers<[2], [1], [1], [2], [0, 0, 0, 1, 1, 2], [0], [0]>} : vector<2x8x8xbf16>, vector<2x8x8xbf16>, vector<2x8x8xf32> -> vector<2x8x8xf32>
      "tpu.trace_stop"() : () -> ()
      %c0_47 = arith.constant 0 : index
      %c0_48 = arith.constant 0 : index
      %c24 = arith.constant 24 : index
      %96 = vector.load %arg16[%c0_47, %c0_48, %c24] : memref<2x8x32xf32, #tpu.memory_space<vmem>>, vector<2x8x8xf32>
      tpu.vector_store %arg16[%c0_47, %c0_48, %c24], %95 {strides = array<i32>} : memref<2x8x32xf32, #tpu.memory_space<vmem>>, vector<2x8x8xf32>,
      %c0_49 = arith.constant 0 : index
      %c0_50 = arith.constant 0 : index
      %c0_51 = arith.constant 0 : index
      %97 = vector.load %arg16[%c0_49, %c0_50, %c0_51] : memref<2x8x32xf32, #tpu.memory_space<vmem>>, vector<2x8x32xf32>
      %98 = arith.truncf %97 : vector<2x8x32xf32> to vector<2x8x32xbf16>
      %99 = arith.index_cast %arg17 : i32 to index
      %c0_52 = arith.constant 0 : index
      %c0_53 = arith.constant 0 : index
      %100 = vector.load %arg4[%99, %c0_52, %c0_53] : memref<2x32x32xbf16, #tpu.memory_space<vmem>>, vector<1x32x32xbf16>
      %101 = vector.shape_cast %100 : vector<1x32x32xbf16> to vector<32x32xbf16>
      "tpu.trace_start"() <{level = 10 : i32, message = "bne,ef->bnf"}> : () -> ()
      %cst_54 = arith.constant dense<0.000000e+00> : vector<2x8x32xf32>
      %102 = tpu.matmul %98, %101, %cst_54 {dimension_numbers = #tpu.dot_dimension_numbers<[2], [0], [0, 1], [1], [0, 0, 0, 1, 1, 1], [], []>} : vector<2x8x32xbf16>, vector<32x32xbf16>, vector<2x8x32xf32> -> vector<2x8x32xf32>
      "tpu.trace_stop"() : () -> ()
      %103 = arith.addf %arg18, %102 : vector<2x8x32xf32>
      %cst_55 = arith.constant dense<0.000000e+00> : vector<32xf32>
      %104 = vector.multi_reduction <add>, %103, %cst_55 [0, 1] : vector<2x8x32xf32> to vector<32xf32>
      %105 = vector.shape_cast %104 : vector<32xf32> to vector<1x1x32xf32>
      %cst_56 = arith.constant 1.600000e+01 : f32
      %106 = vector.broadcast %cst_56 : f32 to vector<1x1x32xf32>
      %107 = arith.divf %105, %106 : vector<1x1x32xf32>
      %108 = vector.broadcast %107 : vector<1x1x32xf32> to vector<2x8x32xf32>
      %109 = arith.subf %103, %108 : vector<2x8x32xf32>
      %110 = arith.mulf %109, %109 : vector<2x8x32xf32>
      %cst_57 = arith.constant dense<0.000000e+00> : vector<32xf32>
      %111 = vector.multi_reduction <add>, %110, %cst_57 [0, 1] : vector<2x8x32xf32> to vector<32xf32>
      %112 = vector.shape_cast %111 : vector<32xf32> to vector<1x1x32xf32>
      %cst_58 = arith.constant 1.600000e+01 : f32
      %113 = vector.broadcast %cst_58 : f32 to vector<1x1x32xf32>
      %114 = arith.divf %112, %113 : vector<1x1x32xf32>
      %cst_59 = arith.constant 9.99999974E-6 : f32
      %115 = vector.broadcast %cst_59 : f32 to vector<1x1x32xf32>
      %116 = arith.addf %114, %115 : vector<1x1x32xf32>
      %117 = math.rsqrt %116 : vector<1x1x32xf32>
      %118 = vector.broadcast %117 : vector<1x1x32xf32> to vector<2x8x32xf32>
      %119 = arith.mulf %109, %118 : vector<2x8x32xf32>
      %120 = arith.index_cast %arg17 : i32 to index
      %c0_60 = arith.constant 0 : index
      %c0_61 = arith.constant 0 : index
      %121 = vector.load %arg5[%120, %c0_60, %c0_61] : memref<2x1x32xf32, #tpu.memory_space<vmem>>, vector<1x1x32xf32>
      %122 = vector.shape_cast %121 : vector<1x1x32xf32> to vector<1x32xf32>
      %123 = vector.shape_cast %122 : vector<1x32xf32> to vector<1x1x32xf32>
      %124 = vector.broadcast %123 : vector<1x1x32xf32> to vector<2x8x32xf32>
      %125 = arith.mulf %119, %124 : vector<2x8x32xf32>
      %126 = arith.index_cast %arg17 : i32 to index
      %c0_62 = arith.constant 0 : index
      %c0_63 = arith.constant 0 : index
      %127 = vector.load %arg6[%126, %c0_62, %c0_63] : memref<2x1x32xf32, #tpu.memory_space<vmem>>, vector<1x1x32xf32>
      %128 = vector.shape_cast %127 : vector<1x1x32xf32> to vector<1x32xf32>
      %129 = vector.shape_cast %128 : vector<1x32xf32> to vector<1x1x32xf32>
      %130 = vector.broadcast %129 : vector<1x1x32xf32> to vector<2x8x32xf32>
      %131 = arith.addf %125, %130 : vector<2x8x32xf32>
      %132 = arith.truncf %131 : vector<2x8x32xf32> to vector<2x8x32xbf16>
      %133 = arith.index_cast %arg17 : i32 to index
      %c0_64 = arith.constant 0 : index
      %c0_65 = arith.constant 0 : index
      %134 = vector.load %arg7[%133, %c0_64, %c0_65] : memref<2x32x128xbf16, #tpu.memory_space<vmem>>, vector<1x32x128xbf16>
      %135 = vector.shape_cast %134 : vector<1x32x128xbf16> to vector<32x128xbf16>
      "tpu.trace_start"() <{level = 10 : i32, message = "bne,ef->bnf"}> : () -> ()
      %cst_66 = arith.constant dense<0.000000e+00> : vector<2x8x128xf32>
      %136 = tpu.matmul %132, %135, %cst_66 {dimension_numbers = #tpu.dot_dimension_numbers<[2], [0], [0, 1], [1], [0, 0, 0, 1, 1, 1], [], []>} : vector<2x8x32xbf16>, vector<32x128xbf16>, vector<2x8x128xf32> -> vector<2x8x128xf32>
      "tpu.trace_stop"() : () -> ()
      %137 = arith.index_cast %arg17 : i32 to index
      %c0_67 = arith.constant 0 : index
      %c0_68 = arith.constant 0 : index
      %138 = vector.load %arg8[%137, %c0_67, %c0_68] : memref<2x1x128xf32, #tpu.memory_space<vmem>>, vector<1x1x128xf32>
      %139 = vector.shape_cast %138 : vector<1x1x128xf32> to vector<1x128xf32>
      %140 = vector.shape_cast %139 : vector<1x128xf32> to vector<1x1x128xf32>
      %141 = vector.broadcast %140 : vector<1x1x128xf32> to vector<2x8x128xf32>
      %142 = arith.addf %136, %141 : vector<2x8x128xf32>
      %cst_69 = arith.constant 0.000000e+00 : f32
      %143 = vector.broadcast %cst_69 : f32 to vector<2x8x128xf32>
      %144 = arith.maximumf %142, %143 : vector<2x8x128xf32>
      %145 = arith.truncf %144 : vector<2x8x128xf32> to vector<2x8x128xbf16>
      %146 = arith.index_cast %arg17 : i32 to index
      %c0_70 = arith.constant 0 : index
      %c0_71 = arith.constant 0 : index
      %147 = vector.load %arg9[%146, %c0_70, %c0_71] : memref<2x128x32xbf16, #tpu.memory_space<vmem>>, vector<1x128x32xbf16>
      %148 = vector.shape_cast %147 : vector<1x128x32xbf16> to vector<128x32xbf16>
      "tpu.trace_start"() <{level = 10 : i32, message = "bnf,fe->bne"}> : () -> ()
      %cst_72 = arith.constant dense<0.000000e+00> : vector<2x8x32xf32>
      %149 = tpu.matmul %145, %148, %cst_72 {dimension_numbers = #tpu.dot_dimension_numbers<[2], [0], [0, 1], [1], [0, 0, 0, 1, 1, 1], [], []>} : vector<2x8x128xbf16>, vector<128x32xbf16>, vector<2x8x32xf32> -> vector<2x8x32xf32>
      "tpu.trace_stop"() : () -> ()
      %150 = arith.index_cast %arg17 : i32 to index
      %c0_73 = arith.constant 0 : index
      %c0_74 = arith.constant 0 : index
      %151 = vector.load %arg10[%150, %c0_73, %c0_74] : memref<2x1x32xf32, #tpu.memory_space<vmem>>, vector<1x1x32xf32>
      %152 = vector.shape_cast %151 : vector<1x1x32xf32> to vector<1x32xf32>
      %153 = vector.shape_cast %152 : vector<1x32xf32> to vector<1x1x32xf32>
      %154 = vector.broadcast %153 : vector<1x1x32xf32> to vector<2x8x32xf32>
      %155 = arith.addf %149, %154 : vector<2x8x32xf32>
      %156 = arith.addf %131, %155 : vector<2x8x32xf32>
      %cst_75 = arith.constant dense<0.000000e+00> : vector<32xf32>
      %157 = vector.multi_reduction <add>, %156, %cst_75 [0, 1] : vector<2x8x32xf32> to vector<32xf32>
      %158 = vector.shape_cast %157 : vector<32xf32> to vector<1x1x32xf32>
      %cst_76 = arith.constant 1.600000e+01 : f32
      %159 = vector.broadcast %cst_76 : f32 to vector<1x1x32xf32>
      %160 = arith.divf %158, %159 : vector<1x1x32xf32>
      %161 = vector.broadcast %160 : vector<1x1x32xf32> to vector<2x8x32xf32>
      %162 = arith.subf %156, %161 : vector<2x8x32xf32>
      %163 = arith.mulf %162, %162 : vector<2x8x32xf32>
      %cst_77 = arith.constant dense<0.000000e+00> : vector<32xf32>
      %164 = vector.multi_reduction <add>, %163, %cst_77 [0, 1] : vector<2x8x32xf32> to vector<32xf32>
      %165 = vector.shape_cast %164 : vector<32xf32> to vector<1x1x32xf32>
      %cst_78 = arith.constant 1.600000e+01 : f32
      %166 = vector.broadcast %cst_78 : f32 to vector<1x1x32xf32>
      %167 = arith.divf %165, %166 : vector<1x1x32xf32>
      %cst_79 = arith.constant 9.99999974E-6 : f32
      %168 = vector.broadcast %cst_79 : f32 to vector<1x1x32xf32>
      %169 = arith.addf %167, %168 : vector<1x1x32xf32>
      %170 = math.rsqrt %169 : vector<1x1x32xf32>
      %171 = vector.broadcast %170 : vector<1x1x32xf32> to vector<2x8x32xf32>
      %172 = arith.mulf %162, %171 : vector<2x8x32xf32>
      %173 = arith.index_cast %arg17 : i32 to index
      %c0_80 = arith.constant 0 : index
      %c0_81 = arith.constant 0 : index
      %174 = vector.load %arg11[%173, %c0_80, %c0_81] : memref<2x1x32xf32, #tpu.memory_space<vmem>>, vector<1x1x32xf32>
      %175 = vector.shape_cast %174 : vector<1x1x32xf32> to vector<1x32xf32>
      %176 = vector.shape_cast %175 : vector<1x32xf32> to vector<1x1x32xf32>
      %177 = vector.broadcast %176 : vector<1x1x32xf32> to vector<2x8x32xf32>
      %178 = arith.mulf %172, %177 : vector<2x8x32xf32>
      %179 = arith.index_cast %arg17 : i32 to index
      %c0_82 = arith.constant 0 : index
      %c0_83 = arith.constant 0 : index
      %180 = vector.load %arg12[%179, %c0_82, %c0_83] : memref<2x1x32xf32, #tpu.memory_space<vmem>>, vector<1x1x32xf32>
      %181 = vector.shape_cast %180 : vector<1x1x32xf32> to vector<1x32xf32>
      %182 = vector.shape_cast %181 : vector<1x32xf32> to vector<1x1x32xf32>
      %183 = vector.broadcast %182 : vector<1x1x32xf32> to vector<2x8x32xf32>
      %184 = arith.addf %178, %183 : vector<2x8x32xf32>
      scf.yield %184 : vector<2x8x32xf32>
    }
    %c2_i32_6 = arith.constant 2 : i32
    %c0_7 = arith.constant 0 : index
    %c0_8 = arith.constant 0 : index
    %c0_9 = arith.constant 0 : index
    %10 = vector.load %arg13[%c0_7, %c0_8, %c0_9] : memref<2x8x32xf32, #tpu.memory_space<vmem>>, vector<2x8x32xf32>
    tpu.vector_store %arg13[%c0_7, %c0_8, %c0_9], %9 {strides = array<i32>} : memref<2x8x32xf32, #tpu.memory_space<vmem>>, vector<2x8x32xf32>,
    %cst_10 = arith.constant dense<0.000000e+00> : vector<2x32xf32>
    %11 = vector.multi_reduction <add>, %9, %cst_10 [1] : vector<2x8x32xf32> to vector<2x32xf32>
    %cst_11 = arith.constant 8.000000e+00 : f32
    %12 = vector.broadcast %cst_11 : f32 to vector<2x32xf32>
    %13 = arith.divf %11, %12 : vector<2x32xf32>
    %c0_12 = arith.constant 0 : index
    %c0_13 = arith.constant 0 : index
    %14 = vector.load %arg14[%c0_12, %c0_13] : memref<2x32xf32, #tpu.memory_space<vmem>>, vector<2x32xf32>
    tpu.vector_store %arg14[%c0_12, %c0_13], %13 {strides = array<i32>} : memref<2x32xf32, #tpu.memory_space<vmem>>, vector<2x32xf32>,
    %15 = vector.extract_strided_slice %9 {offsets = [0, 0, 0], sizes = [2, 1, 32], strides = [1, 1, 1]} : vector<2x8x32xf32> to vector<2x1x32xf32>
    %16 = vector.shape_cast %15 : vector<2x1x32xf32> to vector<2x1x32xf32>
    %17 = vector.broadcast %16 : vector<2x1x32xf32> to vector<2x3x32xf32>
    %c0_14 = arith.constant 0 : index
    %c0_15 = arith.constant 0 : index
    %c0_16 = arith.constant 0 : index
    %18 = vector.load %arg15[%c0_14, %c0_15, %c0_16] : memref<2x3x32xf32, #tpu.memory_space<vmem>>, vector<2x3x32xf32>
    tpu.vector_store %arg15[%c0_14, %c0_15, %c0_16], %17 {strides = array<i32>} : memref<2x3x32xf32, #tpu.memory_space<vmem>>, vector<2x3x32xf32>,
    return
  }
}

</mosaic_0001>

<bundles_post_ra>
// kernel: attention_mtsp_forward.1
= control target key start
LH: loop header
LB: loop body
LE: loop exit
PB: predicated region body
PF: predicated region fallthrough
CT: control target
= control target key end

     0   :  { %21 = vsyncpa [#allocation4], 0  ;;  %s2396_s0 = inlined_call_operand.vmem [shape: f32[2,8,2], index: 0, kind: input, shape index: {}]   ;;  %s2397_s1 = inlined_call_operand.vmem [shape: bf16[2,32], index: 1, kind: input, shape index: {}]   ;;  %s2398_s2 = inlined_call_operand.vmem [shape: f32[1,32], index: 2, kind: input, shape index: {}]   ;;  %s2399_s3 = inlined_call_operand.vmem [shape: bf16[2,32,96], index: 3, kind: input, shape index: {}]   ;;  %s2400_s4 = inlined_call_operand.vmem [shape: bf16[2,32,32], index: 4, kind: input, shape index: {}]   ;;  %s2401_s5 = inlined_call_operand.vmem [shape: f32[2,1,32], index: 5, kind: input, shape index: {}]   ;;  %s2402_s6 = inlined_call_operand.vmem [shape: f32[2,1,32], index: 6, kind: input, shape index: {}]   ;;  %s2403_s7 = inlined_call_operand.vmem [shape: bf16[2,32,128], index: 7, kind: input, shape index: {}]   ;;  %s2404_s8 = inlined_call_operand.vmem [shape: f32[2,1,128], index: 8, kind: input, shape index: {}]   ;;  %s2405_s9 = inlined_call_operand.vmem [shape: bf16[2,128,32], index: 9, kind: input, shape index: {}]   ;;  %s2406_s10 = inlined_call_operand.vmem [shape: f32[2,1,32], index: 10, kind: input, shape index: {}]   ;;  %s2407_s11 = inlined_call_operand.vmem [shape: f32[2,1,32], index: 11, kind: input, shape index: {}]   ;;  %s2408_s12 = inlined_call_operand.vmem [shape: f32[2,1,32], index: 12, kind: input, shape index: {}]   ;;  %s2409_s13 = inlined_call_operand.hbm [shape: f32[2,8,32], index: 13, kind: output, shape index: {0}]   ;;  %s2410_s14 = inlined_call_operand.hbm [shape: f32[2,32], index: 14, kind: output, shape index: {1}]   ;;  %s2411_s15 = inlined_call_operand.vmem [shape: f32[2,3,32], index: 15, kind: output, shape index: {2}]  }
   0x1   :  { %22 = vsyncpa [#allocation6], 0  ;;  %v54_v0 = vld [vmem:[%s2397_s1] sm:$0x1]  ;;  %vm71_vm0 = vcmask 1040384   ;;  %v2015_v1 = vmov 0.0  }
   0x2   :  { %1705 = vmatprep.subr.bf16.mxu0 %v2015_v1  ;;  %v73_v2 = vsel %vm71_vm0, %v54_v0, 0  ;;  %v50_v3 = vld [vmem:[%s2396_s0] sm:$0xff]  ;;  %v51_v4 = vld [vmem:[%s2396_s0 + $0x8] sm:$0xff]  ;;  %vm2016_vm1 = vmmov 0   ;;  %vm67_vm2 = vcmask 15360   ;;  %s2133_s0 = smov 0  }
   0x3   :  { %1706 = vmatpush3.bf16.msra.mxu0 %v73_v2  ;;  %1707 = vmatprep.mubr.msk.bf16.mxu0 %vm2016_vm1, %v2015_v1  ;;  %v1644_v5 = vpack.c.bf16 %v51_v4, %v50_v3  ;;  %v1592_v6 = vld [vmem:[%s2398_s2] ss:$0 sm:$0xff] }
   0x6   :  { %1708 = vmatmul.mubr.msk.bf16.vlgmr.msra.gmra.mxu0 %vm67_vm2, %v1644_v5 }
  0xc6   :  { %v109_v7 = vpop.f32.mrf.mxu0 }
  0xc7   :  { %v110_v8 = vadd.f32 %v1592_v6, %v109_v7  }
  0xc8   :  { %v1709_v9 = vpop.f32.mrf.mxu0 }
  0xca   :  { %v112_v10 = vpop.f32.mrf.mxu0 }
  0xcb   :  { %v113_v11 = vadd.f32 %v1592_v6, %v112_v10  }
  0xcc   :  { %v1710_v12 = vpop.f32.mrf.mxu0 }
  0xcd LB: > { %v2017_v13 = vmov 0.0   ;;  %vm2018_vm3 = vmmov 0   ;;  %s1645_s2 = sshll.u32 %s2013_s0, 4  ;;  %s1651_s28 = sshll.u32 %s2013_s0, 6  ;;  %vm150_vm4 = vcmask 261120   ;;  %v1646_v16 = vpack.c.bf16 %v2005_v11, %v2009_v8  ;;  %s2013_s0 = sphi %s2133_s0, %s121_s0   ;;  %v2009_v8 = vphi %v110_v8, %v2413_v8   ;;  %v2005_v11 = vphi %v113_v11, %v2412_v11  }
  0xce   : > { %1711 = vmatprep.subr.bf16.mxu0 %v2017_v13  ;;  %1715 = vmatprep.mubr.msk.bf16.mxu0 %vm2018_vm3, %v2017_v13  ;;  %s128_s27 = scalar_lea.vmem %s2399_s3, %s1645_s2  ;;  %s2158_s16 = scalar_lea.vmem %s2400_s4, %s1645_s2  ;;  %vm200_vm5 = vcmask 64512   ;;  %vm327_vm6 = vcmask 1043456   ;;  %vm651_vm7 = vcmask 130112   ;;  %vm884_vm8 = vcmask 195712  }
  0xcf   : > { %1731 = vmatprep.subr.bf16.mxu1 %v2017_v13  ;;  %1733 = vmatprep.mubr.msk.bf16.mxu1 %vm2018_vm3, %v2017_v13  ;;  %v1897_v14 = vld [vmem:[%s128_s27 + $0x8] sm:$0xff]   ;;  %v1898_v15 = vld [vmem:[%s128_s27] sm:$0xff]   ;;  %s2163_s19 = scalar_lea.vmem %s2403_s7, %s1645_s2  ;;  %s2168_s22 = scalar_lea.vmem %s2405_s9, %s1651_s28  ;;  %vm1117_vm9 = vcmask 261312  }
  0xd0   : > { %1712 = vmatpush3.bf16.msra.mxu0 %v1897_v14  ;;  %s2019_s23 = smov 96   ;;  %s2020_s24 = smov 64  }
  0xd1   : > { %1713 = vmatprep.subr.bf16.mxu0 %v2017_v13  ;;  %s2021_s1 = smov 88   ;;  %s2022_s2 = smov 120  }
  0xd2   : > { %s2023_s25 = smov 56   ;;  %s2024_s26 = smov 80  }
  0xd3   : > { %s2025_s27 = smov 112   ;;  %s2026_s28 = smov 48  }
  0xd4   : > { %1714 = vmatpush3.bf16.msra.mxu0 %v1898_v15  ;;  %s2027_s29 = smov 72   ;;  %s2028_s30 = smov 104  }
  0xd5   : > { %1719 = vmatprep.subr.bf16.mxu0 %v2017_v13  ;;  %s2029_s17 = smov 40   ;;  %s2030_s18 = smov 8  }
  0xd6   : > { %s2031_s20 = smov 16   ;;  %s2032_s21 = smov 24  }
  0xd7   : > { %1716 = vmatmul.mubr.msk.bf16.vlgmr.msra.gmra.mxu0 %vm150_vm4, %v1646_v16 }
  0xd8   : > { %1721 = vmatprep.mubr.msk.bf16.mxu0 %vm2018_vm3, %v2017_v13 }
 0x197   : > { %v188_v17 = vpop.f32.mrf.mxu0 }
 0x198   : > { %v2177_v18 = vpack.c.bf16 %v188_v17, %v188_v17 }
 0x199   : > { %v1717_v19 = vpop.f32.mrf.mxu0 }
 0x19a   : > { %198 = vrot.lane.b32.xlu0 %v2177_v18, %s2019_s23 }
 0x19b   : > { %v191_v20 = vpop.f32.mrf.mxu0 }
 0x19c   : > { %v2180_v21 = vpack.c.bf16 %v191_v20, %v191_v20 }
 0x19d   : > { %v1718_v22 = vpop.f32.mrf.mxu0 }
 0x19e   : > { %248 = vrot.lane.b32.xlu0 %v2180_v21, %s2019_s23  ;;  %s1222_s23 = scalar_lea.vmem %s2401_s5, %s2013_s0 }
 0x20c   : > { %v199_v23 = vpop.permute.xlu0 %198 }
 0x20d   : > { %v205_v24 = vsel %vm200_vm5, %v199_v23, 0 }
 0x20e   : > { %1720 = vmatpush3.bf16.xpose.msra.mxu0 %v205_v24 }
 0x20f   : > { %1725 = vmatprep.subr.bf16.mxu0 %v2017_v13 }
 0x210   : > { %v249_v25 = vpop.permute.xlu0 %248 }
 0x211   : > { %v254_v26 = vsel %vm200_vm5, %v249_v25, 0 }
 0x215   : > { %1722 = vmatmul.mubr.msk.bf16.vlgmr.msra.gmra.mxu0 %vm200_vm5, %v2177_v18 }
 0x216   : > { %1726 = vmatpush3.bf16.xpose.msra.mxu0 %v254_v26  ;;  %1727 = vmatprep.mubr.msk.bf16.mxu0 %vm2018_vm3, %v2017_v13 }
 0x217   : > { %1737 = vmatprep.subr.bf16.mxu0 %v2017_v13 }
 0x21d   : > { %1728 = vmatmul.mubr.msk.bf16.vlgmr.msra.gmra.mxu0 %vm200_vm5, %v2180_v21 }
 0x21e   : > { %1739 = vmatprep.mubr.msk.bf16.mxu0 %vm2018_vm3, %v2017_v13 }
 0x2d5   : > { %v241_v27 = vpop.f32.mrf.mxu0 }
 0x2d6   : > { %v296_v28 = vmul.f32 0.35355338, %v241_v27 }
 0x2d7   : > { %v1723_v29 = vpop.f32.mrf.mxu0 }
 0x2d8   : > { %v298_v30 = vsel %vm200_vm5, %v296_v28, -inf }
 0x2d9   : > { %299 = vmax.xlane.f32.xlu1 %v298_v30  ;;  %v244_v31 = vpop.f32.mrf.mxu0 }
 0x2db   : > { %v1724_v32 = vpop.f32.mrf.mxu0 }
 0x2dd   : > { %v290_v33 = vpop.f32.mrf.mxu0 }
 0x2de   : > { %v297_v34 = vmul.f32 0.35355338, %v290_v33 }
 0x2df   : > { %v1729_v35 = vpop.f32.mrf.mxu0 }
 0x2e0   : > { %v301_v36 = vsel %vm200_vm5, %v297_v34, -inf }
 0x2e1   : > { %302 = vmax.xlane.f32.xlu1 %v301_v36  ;;  %v293_v37 = vpop.f32.mrf.mxu0 }
 0x2e3   : > { %v1730_v38 = vpop.f32.mrf.mxu0 }
 0x2f2   : > { %322 = vrot.lane.b32.xlu1 %v2177_v18, %s2020_s24 }
 0x2f6   : > { %371 = vrot.lane.b32.xlu1 %v2180_v21, %s2020_s24 }
 0x2fa   : > { %423 = vrot.lane.b32.xlu1 %v2177_v18, %s2021_s1 }
 0x362   : > { %v300_v39 = vpop.xlane.xlu1 %299 }
 0x363   : > { %v304_v40 = vsub.f32 %v296_v28, %v300_v39 }
 0x365   : > { %v306_v41 = vmul.f32 1.442695, %v304_v40 }
 0x367   : > { %1911 = vpow2.f32 %v306_v41 }
 0x36a   : > { %v303_v42 = vpop.xlane.xlu1 %302 }
 0x36b   : > { %v305_v43 = vsub.f32 %v297_v34, %v303_v42 }
 0x36d   : > { %v308_v44 = vmul.f32 1.442695, %v305_v43 }
 0x36e   : > { %v323_v45 = vpop.permute.xlu1 %322 }
 0x36f   : > { %1913 = vpow2.f32 %v308_v44  ;;  %v329_v46 = vsel %vm327_vm6, %v323_v45, 0 }
 0x370   : > { %1732 = vmatpush3.bf16.msra.mxu1 %v329_v46 }
 0x371   : > { %1743 = vmatprep.subr.bf16.mxu1 %v2017_v13 }
 0x372   : > { %v372_v47 = vpop.permute.xlu1 %371 }
 0x373   : > { %v377_v48 = vsel %vm327_vm6, %v372_v47, 0 }
 0x374   : > { %v1912_v49 = vpop.eup %1911  ;;  %1738 = vmatpush3.bf16.msra.mxu0 %v377_v48 }
 0x375   : > { %v310_v50 = vsel %vm200_vm5, %v1912_v49, 0.0  ;;  %1749 = vmatprep.subr.bf16.mxu0 %v2017_v13 }
 0x376   : > { %311 = vadd.xlane.f32.xlu0 %v310_v50  ;;  %v424_v54 = vpop.permute.xlu1 %423 }
 0x377   : > { %v429_v59 = vsel %vm200_vm5, %v424_v54, 0 }
 0x37c   : > { %v1914_v51 = vpop.eup %1913 }
 0x37d   : > { %v313_v52 = vsel %vm200_vm5, %v1914_v51, 0.0 }
 0x37e   : > { %314 = vadd.xlane.f32.xlu1 %v313_v52 }
 0x38c   : > { %421 = vrot.lane.b32.xlu0 %v2177_v18, %s2022_s2 }
 0x38f   : > { %473 = vrot.lane.b32.xlu1 %v2180_v21, %s2021_s1 }
 0x393   : > { %471 = vrot.lane.b32.xlu1 %v2180_v21, %s2022_s2  ;;  %s1232_s2 = scalar_lea.vmem %s2402_s6, %s2013_s0 }
 0x3ff   : > { %v312_v53 = vpop.xlane.xlu0 %311 }
 0x400   : > { %1915 = vrcp.f32 %v312_v53 }
 0x403   : > { %v422_v0 = vpop.permute.xlu0 %421 }
 0x407   : > { %v315_v55 = vpop.xlane.xlu1 %314 }
 0x408   : > { %1917 = vrcp.f32 %v315_v55 }
 0x40b   : > { %v474_v62 = vpop.permute.xlu1 %473 }
 0x40c   : > { %v479_v1 = vsel %vm200_vm5, %v474_v62, 0 }
 0x40d   : > { %v1916_v56 = vpop.eup %1915 }
 0x40e   : > { %v317_v57 = vmul.f32 %v1916_v56, %v1912_v49 }
 0x40f   : > { %v472_v2 = vpop.permute.xlu1 %471 }
 0x410   : > { %v320_v58 = vpack.c.bf16 %v317_v57, %v317_v57 }
 0x412   : > { %1734 = vmatmul.mubr.msk.bf16.vlgmr.msra.gmra.mxu1 %vm200_vm5, %v320_v58 }
 0x413   : > { %1744 = vmatpush3.bf16.xpose.msra.mxu1 %v429_v59  ;;  %1745 = vmatprep.mubr.msk.bf16.mxu1 %vm2018_vm3, %v2017_v13 }
 0x414   : > { %1755 = vmatprep.subr.bf16.mxu1 %v2017_v13 }
 0x415   : > { %v1918_v60 = vpop.eup %1917 }
 0x416   : > { %v319_v61 = vmul.f32 %v1918_v60, %v1914_v51 }
 0x418   : > { %v321_v63 = vpack.c.bf16 %v319_v61, %v319_v61 }
 0x41a   : > { %1740 = vmatmul.mubr.msk.bf16.vlgmr.msra.gmra.mxu0 %vm200_vm5, %v321_v63  ;;  %1746 = vmatmul.mubr.msk.bf16.vlgmr.msra.gmra.mxu1 %vm200_vm5, %v422_v0 }
 0x41b   : > { %1750 = vmatpush3.bf16.xpose.msra.mxu0 %v479_v1  ;;  %1751 = vmatprep.mubr.msk.bf16.mxu0 %vm2018_vm3, %v2017_v13 }
 0x41c   : > { %1761 = vmatprep.subr.bf16.mxu0 %v2017_v13  ;;  %1757 = vmatprep.mubr.msk.bf16.mxu1 %vm2018_vm3, %v2017_v13 }
 0x422   : > { %1752 = vmatmul.mubr.msk.bf16.vlgmr.msra.gmra.mxu0 %vm200_vm5, %v472_v2 }
 0x423   : > { %1763 = vmatprep.mubr.msk.bf16.mxu0 %vm2018_vm3, %v2017_v13 }
 0x4d2   : > { %v365_v3 = vpop.f32.mrf.mxu1 }
 0x4d3   : > { %419 = vst.msk [vmem:[#allocation2] sm:$0xff] %vm200_vm5, %v365_v3 }
 0x4d4   : > { %v1735_v4 = vpop.f32.mrf.mxu1 }
 0x4d6   : > { %v368_v5 = vpop.f32.mrf.mxu1 }
 0x4d8   : > { %v1736_v6 = vpop.f32.mrf.mxu1 }
 0x4da   : > { %v413_v7 = vpop.f32.mrf.mxu0  ;;  %v465_v9 = vpop.f32.mrf.mxu1 }
 0x4db   : > { %420 = vst.msk [vmem:[#allocation2 + $0x8] sm:$0xff] %vm200_vm5, %v413_v7  ;;  %v521_v10 = vmul.f32 0.35355338, %v465_v9 }
 0x4dc   : > { %v1741_v12 = vpop.f32.mrf.mxu0  ;;  %v1747_v14 = vpop.f32.mrf.mxu1 }
 0x4dd   : > { %v523_v15 = vsel %vm200_vm5, %v521_v10, -inf }
 0x4de   : > { %524 = vmax.xlane.f32.xlu1 %v523_v15  ;;  %v416_v16 = vpop.f32.mrf.mxu0  ;;  %v468_v17 = vpop.f32.mrf.mxu1 }
 0x4e0   : > { %v1742_v19 = vpop.f32.mrf.mxu0  ;;  %v1748_v20 = vpop.f32.mrf.mxu1 }
 0x4e2   : > { %v515_v22 = vpop.f32.mrf.mxu0 }
 0x4e3   : > { %v522_v23 = vmul.f32 0.35355338, %v515_v22 }
 0x4e4   : > { %v1753_v24 = vpop.f32.mrf.mxu0 }
 0x4e5   : > { %v526_v25 = vsel %vm200_vm5, %v522_v23, -inf }
 0x4e6   : > { %527 = vmax.xlane.f32.xlu0 %v526_v25  ;;  %v518_v26 = vpop.f32.mrf.mxu0 }
 0x4e8   : > { %v1754_v27 = vpop.f32.mrf.mxu0 }
 0x4ef   : > { %547 = vrot.lane.b32.xlu1 %v2177_v18, %s2023_s25 }
 0x4f3   : > { %656 = vrot.lane.b32.xlu1 %v2177_v18, %s2024_s26 }
 0x4fc   : > { %595 = vrot.lane.b32.xlu0 %v2180_v21, %s2023_s25 }
 0x500   : > { %654 = vrot.lane.b32.xlu0 %v2177_v18, %s2025_s27 }
 0x567   : > { %v525_v28 = vpop.xlane.xlu1 %524 }
 0x568   : > { %v529_v29 = vsub.f32 %v521_v10, %v525_v28 }
 0x56a   : > { %v531_v30 = vmul.f32 1.442695, %v529_v29 }
 0x56b   : > { %v548_v31 = vpop.permute.xlu1 %547 }
 0x56c   : > { %1919 = vpow2.f32 %v531_v30  ;;  %v553_v32 = vsel %vm327_vm6, %v548_v31, 0 }
 0x56d   : > { %1756 = vmatpush3.bf16.msra.mxu1 %v553_v32 }
 0x56e   : > { %1767 = vmatprep.subr.bf16.mxu1 %v2017_v13 }
 0x56f   : > { %v528_v33 = vpop.xlane.xlu0 %527  ;;  %v657_v42 = vpop.permute.xlu1 %656 }
 0x570   : > { %v530_v34 = vsub.f32 %v522_v23, %v528_v33  ;;  %v662_v48 = vsel %vm200_vm5, %v657_v42, 0 }
 0x572   : > { %v533_v35 = vmul.f32 1.442695, %v530_v34 }
 0x573   : > { %v596_v36 = vpop.permute.xlu0 %595 }
 0x574   : > { %1921 = vpow2.f32 %v533_v35  ;;  %v601_v37 = vsel %vm327_vm6, %v596_v36, 0 }
 0x575   : > { %1762 = vmatpush3.bf16.msra.mxu0 %v601_v37 }
 0x576   : > { %1773 = vmatprep.subr.bf16.mxu0 %v2017_v13 }
 0x577   : > { %v655_v53 = vpop.permute.xlu0 %654 }
 0x579   : > { %v1920_v38 = vpop.eup %1919 }
 0x57a   : > { %v535_v39 = vsel %vm200_vm5, %v1920_v38, 0.0 }
 0x57b   : > { %536 = vadd.xlane.f32.xlu1 %v535_v39 }
 0x581   : > { %v1922_v40 = vpop.eup %1921 }
 0x582   : > { %v538_v41 = vsel %vm200_vm5, %v1922_v40, 0.0 }
 0x583   : > { %539 = vadd.xlane.f32.xlu1 %v538_v41 }
 0x594   : > { %706 = vrot.lane.b32.xlu1 %v2180_v21, %s2024_s26 }
 0x598   : > { %704 = vrot.lane.b32.xlu1 %v2180_v21, %s2025_s27  ;;  %s1250_s27 = scalar_lea.vmem %s2404_s8, %s2013_s0 }
 0x604   : > { %v537_v43 = vpop.xlane.xlu1 %536 }
 0x605   : > { %1923 = vrcp.f32 %v537_v43 }
 0x60c   : > { %v540_v44 = vpop.xlane.xlu1 %539 }
 0x60d   : > { %1925 = vrcp.f32 %v540_v44 }
 0x610   : > { %v707_v51 = vpop.permute.xlu1 %706 }
 0x611   : > { %v712_v54 = vsel %vm200_vm5, %v707_v51, 0 }
 0x612   : > { %v1924_v45 = vpop.eup %1923 }
 0x613   : > { %v542_v46 = vmul.f32 %v1924_v45, %v1920_v38 }
 0x614   : > { %v705_v55 = vpop.permute.xlu1 %704 }
 0x615   : > { %v545_v47 = vpack.c.bf16 %v542_v46, %v542_v46 }
 0x617   : > { %1758 = vmatmul.mubr.msk.bf16.vlgmr.msra.gmra.mxu1 %vm200_vm5, %v545_v47 }
 0x618   : > { %1768 = vmatpush3.bf16.xpose.msra.mxu1 %v662_v48  ;;  %1769 = vmatprep.mubr.msk.bf16.mxu1 %vm2018_vm3, %v2017_v13 }
 0x619   : > { %1779 = vmatprep.subr.bf16.mxu1 %v2017_v13 }
 0x61a   : > { %v1926_v49 = vpop.eup %1925 }
 0x61b   : > { %v544_v50 = vmul.f32 %v1926_v49, %v1922_v40 }
 0x61d   : > { %v546_v52 = vpack.c.bf16 %v544_v50, %v544_v50 }
 0x61f   : > { %1764 = vmatmul.mubr.msk.bf16.vlgmr.msra.gmra.mxu0 %vm200_vm5, %v546_v52  ;;  %1770 = vmatmul.mubr.msk.bf16.vlgmr.msra.gmra.mxu1 %vm200_vm5, %v655_v53 }
 0x620   : > { %1774 = vmatpush3.bf16.xpose.msra.mxu0 %v712_v54  ;;  %1775 = vmatprep.mubr.msk.bf16.mxu0 %vm2018_vm3, %v2017_v13 }
 0x621   : > { %1785 = vmatprep.subr.bf16.mxu0 %v2017_v13  ;;  %1781 = vmatprep.mubr.msk.bf16.mxu1 %vm2018_vm3, %v2017_v13 }
 0x627   : > { %1776 = vmatmul.mubr.msk.bf16.vlgmr.msra.gmra.mxu0 %vm200_vm5, %v705_v55 }
 0x628   : > { %1787 = vmatprep.mubr.msk.bf16.mxu0 %vm2018_vm3, %v2017_v13 }
 0x6d7   : > { %v2257_v56 = vpop.f32.mrf.mxu1 }
 0x6d9   : > { %v1759_v57 = vpop.f32.mrf.mxu1 }
 0x6db   : > { %v592_v58 = vpop.f32.mrf.mxu1 }
 0x6dd   : > { %v1760_v59 = vpop.f32.mrf.mxu1 }
 0x6df   : > { %v2259_v60 = vpop.f32.mrf.mxu0  ;;  %v698_v61 = vpop.f32.mrf.mxu1 }
 0x6e0   : > { %v754_v62 = vmul.f32 0.35355338, %v698_v61 }
 0x6e1   : > { %v1765_v63 = vpop.f32.mrf.mxu0  ;;  %v1771_v0 = vpop.f32.mrf.mxu1 }
 0x6e2   : > { %v756_v1 = vsel %vm200_vm5, %v754_v62, -inf }
 0x6e3   : > { %757 = vmax.xlane.f32.xlu0 %v756_v1  ;;  %v640_v2 = vpop.f32.mrf.mxu0  ;;  %v701_v3 = vpop.f32.mrf.mxu1 }
 0x6e5   : > { %v1766_v4 = vpop.f32.mrf.mxu0  ;;  %v1772_v5 = vpop.f32.mrf.mxu1 }
 0x6e7   : > { %v748_v6 = vpop.f32.mrf.mxu0 }
 0x6e8   : > { %v755_v7 = vmul.f32 0.35355338, %v748_v6 }
 0x6e9   : > { %v1777_v9 = vpop.f32.mrf.mxu0 }
 0x6ea   : > { %v759_v10 = vsel %vm200_vm5, %v755_v7, -inf }
 0x6eb   : > { %760 = vmax.xlane.f32.xlu1 %v759_v10  ;;  %v751_v12 = vpop.f32.mrf.mxu0 }
 0x6ed   : > { %v1778_v14 = vpop.f32.mrf.mxu0 }
 0x6fc   : > { %780 = vrot.lane.b32.xlu1 %v2177_v18, %s2026_s28 }
 0x700   : > { %889 = vrot.lane.b32.xlu1 %v2177_v18, %s2027_s29 }
 0x704   : > { %939 = vrot.lane.b32.xlu1 %v2180_v21, %s2027_s29 }
 0x708   : > { %937 = vrot.lane.b32.xlu1 %v2180_v21, %s2028_s30 }
 0x76c   : > { %v758_v15 = vpop.xlane.xlu0 %757 }
 0x76d   : > { %v762_v16 = vsub.f32 %v754_v62, %v758_v15 }
 0x76f   : > { %v764_v17 = vmul.f32 1.442695, %v762_v16 }
 0x771   : > { %1927 = vpow2.f32 %v764_v17 }
 0x774   : > { %v761_v19 = vpop.xlane.xlu1 %760 }
 0x775   : > { %v763_v20 = vsub.f32 %v755_v7, %v761_v19 }
 0x777   : > { %v766_v22 = vmul.f32 1.442695, %v763_v20 }
 0x778   : > { %v781_v23 = vpop.permute.xlu1 %780 }
 0x779   : > { %1929 = vpow2.f32 %v766_v22  ;;  %v786_v24 = vsel %vm327_vm6, %v781_v23, 0 }
 0x77a   : > { %1780 = vmatpush3.bf16.msra.mxu1 %v786_v24 }
 0x77b   : > { %1791 = vmatprep.subr.bf16.mxu1 %v2017_v13 }
 0x77c   : > { %v890_v35 = vpop.permute.xlu1 %889 }
 0x77d   : > { %v895_v37 = vsel %vm200_vm5, %v890_v35, 0 }
 0x77e   : > { %v1928_v25 = vpop.eup %1927 }
 0x77f   : > { %v768_v26 = vsel %vm200_vm5, %v1928_v25, 0.0 }
 0x780   : > { %769 = vadd.xlane.f32.xlu0 %v768_v26  ;;  %v940_v40 = vpop.permute.xlu1 %939 }
 0x781   : > { %v945_v43 = vsel %vm200_vm5, %v940_v40, 0 }
 0x784   : > { %v938_v44 = vpop.permute.xlu1 %937 }
 0x786   : > { %v1930_v27 = vpop.eup %1929 }
 0x787   : > { %v771_v28 = vsel %vm200_vm5, %v1930_v27, 0.0 }
 0x788   : > { %772 = vadd.xlane.f32.xlu0 %v771_v28 }
 0x79e   : > { %828 = vrot.lane.b32.xlu0 %v2180_v21, %s2026_s28 }
 0x7a2   : > { %887 = vrot.lane.b32.xlu0 %v2177_v18, %s2028_s30 }
 0x809   : > { %v770_v29 = vpop.xlane.xlu0 %769 }
 0x80a   : > { %1931 = vrcp.f32 %v770_v29 }
 0x811   : > { %v773_v30 = vpop.xlane.xlu0 %772 }
 0x812   : > { %1933 = vrcp.f32 %v773_v30  ;;  %v1899_v30 = vld [vmem:[%s2158_s16 + $0x8] sm:$0xff]  }
 0x815   : > { %v829_v31 = vpop.permute.xlu0 %828 }
 0x816   : > { %v834_v32 = vsel %vm327_vm6, %v829_v31, 0  ;;  %v1900_v31 = vld [vmem:[%s2158_s16] sm:$0xff]   ;;  %s1485_s16 = scalar_lea.vmem %s2408_s12, %s2013_s0 }
 0x817   : > { %v1932_v33 = vpop.eup %1931  ;;  %1786 = vmatpush3.bf16.msra.mxu0 %v834_v32 }
 0x818   : > { %v775_v34 = vmul.f32 %v1932_v33, %v1928_v25  ;;  %1797 = vmatprep.subr.bf16.mxu0 %v2017_v13 }
 0x819   : > { %v888_v42 = vpop.permute.xlu0 %887 }
 0x81a   : > { %v778_v36 = vpack.c.bf16 %v775_v34, %v775_v34 }
 0x81c   : > { %1782 = vmatmul.mubr.msk.bf16.vlgmr.msra.gmra.mxu1 %vm200_vm5, %v778_v36 }
 0x81d   : > { %1792 = vmatpush3.bf16.xpose.msra.mxu1 %v895_v37  ;;  %1793 = vmatprep.mubr.msk.bf16.mxu1 %vm2018_vm3, %v2017_v13 }
 0x81e   : > { %1803 = vmatprep.subr.bf16.mxu1 %v2017_v13 }
 0x81f   : > { %v1934_v38 = vpop.eup %1933 }
 0x820   : > { %v777_v39 = vmul.f32 %v1934_v38, %v1930_v27 }
 0x822   : > { %v779_v41 = vpack.c.bf16 %v777_v39, %v777_v39 }
 0x824   : > { %1788 = vmatmul.mubr.msk.bf16.vlgmr.msra.gmra.mxu0 %vm200_vm5, %v779_v41  ;;  %1794 = vmatmul.mubr.msk.bf16.vlgmr.msra.gmra.mxu1 %vm200_vm5, %v888_v42 }
 0x825   : > { %1798 = vmatpush3.bf16.xpose.msra.mxu0 %v945_v43  ;;  %1799 = vmatprep.mubr.msk.bf16.mxu0 %vm2018_vm3, %v2017_v13 }
 0x826   : > { %1809 = vmatprep.subr.bf16.mxu0 %v2017_v13  ;;  %1805 = vmatprep.mubr.msk.bf16.mxu1 %vm2018_vm3, %v2017_v13 }
 0x82c   : > { %1800 = vmatmul.mubr.msk.bf16.vlgmr.msra.gmra.mxu0 %vm200_vm5, %v938_v44 }
 0x82d   : > { %1811 = vmatprep.mubr.msk.bf16.mxu0 %vm2018_vm3, %v2017_v13 }
 0x8dc   : > { %v822_v45 = vpop.f32.mrf.mxu1 }
 0x8de   : > { %v1783_v46 = vpop.f32.mrf.mxu1 }
 0x8df   : > { %v1902_v46 = vld [vmem:[%s2163_s19] sm:$0xff]  }
 0x8e0   : > { %v825_v47 = vpop.f32.mrf.mxu1 }
 0x8e1   : > { %v1903_v47 = vld [vmem:[%s2168_s22 + $0x38] sm:$0xff]  }
 0x8e2   : > { %v1784_v48 = vpop.f32.mrf.mxu1 }
 0x8e3   : > { %v1904_v48 = vld [vmem:[%s2168_s22 + $0x30] sm:$0xff]  }
 0x8e4   : > { %v870_v49 = vpop.f32.mrf.mxu0  ;;  %v931_v50 = vpop.f32.mrf.mxu1 }
 0x8e5   : > { %v987_v51 = vmul.f32 0.35355338, %v931_v50  ;;  %v1906_v50 = vld [vmem:[%s2168_s22 + $0x20] sm:$0xff]  }
 0x8e6   : > { %v1789_v52 = vpop.f32.mrf.mxu0  ;;  %v1795_v53 = vpop.f32.mrf.mxu1 }
 0x8e7   : > { %v989_v54 = vsel %vm200_vm5, %v987_v51, -inf }
 0x8e8   : > { %990 = vmax.xlane.f32.xlu0 %v989_v54  ;;  %v873_v55 = vpop.f32.mrf.mxu0  ;;  %v934_v57 = vpop.f32.mrf.mxu1 }
 0x8ea   : > { %v1790_v58 = vpop.f32.mrf.mxu0  ;;  %v1796_v59 = vpop.f32.mrf.mxu1 }
 0x8ec   : > { %v981_v61 = vpop.f32.mrf.mxu0 }
 0x8ed   : > { %v988_v62 = vmul.f32 0.35355338, %v981_v61 }
 0x8ee   : > { %v1801_v63 = vpop.f32.mrf.mxu0 }
 0x8ef   : > { %v992_v0 = vsel %vm200_vm5, %v988_v62, -inf }
 0x8f0   : > { %993 = vmax.xlane.f32.xlu1 %v992_v0  ;;  %v984_v1 = vpop.f32.mrf.mxu0 }
 0x8f2   : > { %v1802_v2 = vpop.f32.mrf.mxu0 }
 0x901   : > { %1013 = vrot.lane.b32.xlu1 %v2177_v18, %s2029_s17 }
 0x905   : > { %645 = vrot.lane.b32.xlu1 %v2257_v56, %s2030_s18 }
 0x909   : > { %647 = vrot.lane.b32.xlu1 %v2259_v60, %s2030_s18  ;;  %s1475_s18 = scalar_lea.vmem %s2407_s11, %s2013_s0 }
 0x90d   : > { %880 = vrot.lane.b32.xlu1 %v870_v49, %s2031_s20  ;;  %v1905_v49 = vld [vmem:[%s2168_s22 + $0x28] sm:$0xff]  }
 0x971   : > { %v991_v3 = vpop.xlane.xlu0 %990 }
 0x972   : > { %v995_v4 = vsub.f32 %v987_v51, %v991_v3  ;;  %v1907_v51 = vld [vmem:[%s2168_s22 + $0x18] sm:$0xff]  }
 0x974   : > { %v997_v5 = vmul.f32 1.442695, %v995_v4 }
 0x976   : > { %1935 = vpow2.f32 %v997_v5 }
 0x979   : > { %v994_v6 = vpop.xlane.xlu1 %993 }
 0x97a   : > { %v996_v7 = vsub.f32 %v988_v62, %v994_v6 }
 0x97c   : > { %v999_v9 = vmul.f32 1.442695, %v996_v7 }
 0x97d   : > { %v1014_v10 = vpop.permute.xlu1 %1013 }
 0x97e   : > { %1937 = vpow2.f32 %v999_v9  ;;  %v1019_v12 = vsel %vm327_vm6, %v1014_v10, 0 }
 0x97f   : > { %1804 = vmatpush3.bf16.msra.mxu1 %v1019_v12 }
 0x980   : > { %1815 = vmatprep.subr.bf16.mxu1 %v2017_v13 }
 0x981   : > { %v646_v18 = vpop.permute.xlu1 %645 }
 0x982   : > { %652 = vst.msk [vmem:[#allocation2] sm:$0xff] %vm651_vm7, %v646_v18 }
 0x983   : > { %v1936_v56 = vpop.eup %1935 }
 0x984   : > { %v1001_v60 = vsel %vm200_vm5, %v1936_v56, 0.0 }
 0x985   : > { %1002 = vadd.xlane.f32.xlu0 %v1001_v60  ;;  %v648_v14 = vpop.permute.xlu1 %647 }
 0x986   : > { %653 = vst.msk [vmem:[#allocation2 + $0x8] sm:$0xff] %vm651_vm7, %v648_v14 }
 0x989   : > { %v881_v15 = vpop.permute.xlu1 %880 }
 0x98a   : > { %886 = vst.msk [vmem:[#allocation2 + $0x8] sm:$0xff] %vm884_vm8, %v881_v15 }
 0x98b   : > { %v1938_v16 = vpop.eup %1937 }
 0x98c   : > { %v1004_v17 = vsel %vm200_vm5, %v1938_v16, 0.0 }
 0x98d   : > { %1005 = vadd.xlane.f32.xlu0 %v1004_v17 }
 0x9a3   : > { %1061 = vrot.lane.b32.xlu0 %v2180_v21, %s2029_s17 }
 0x9a7   : > { %878 = vrot.lane.b32.xlu0 %v822_v45, %s2031_s20  ;;  %v1901_v45 = vld [vmem:[%s2163_s19 + $0x8] sm:$0xff]  }
 0xa0e   : > { %v1003_v19 = vpop.xlane.xlu0 %1002 }
 0xa0f   : > { %1939 = vrcp.f32 %v1003_v19 }
 0xa16   : > { %v1006_v20 = vpop.xlane.xlu0 %1005 }
 0xa17   : > { %1941 = vrcp.f32 %v1006_v20 }
 0xa1a   : > { %v1062_v22 = vpop.permute.xlu0 %1061 }
 0xa1b   : > { %v1067_v23 = vsel %vm327_vm6, %v1062_v22, 0  ;;  %v1622_v22 = vld [vmem:[%s1222_s23] ss:$0 sm:$0xff] }
 0xa1c   : > { %v1940_v24 = vpop.eup %1939  ;;  %1810 = vmatpush3.bf16.msra.mxu0 %v1067_v23 }
 0xa1d   : > { %v1008_v25 = vmul.f32 %v1940_v24, %v1936_v56  ;;  %1823 = vmatprep.subr.bf16.mxu0 %v2017_v13 }
 0xa1e   : > { %v879_v26 = vpop.permute.xlu0 %878 }
 0xa1f   : > { %885 = vst.msk [vmem:[#allocation2] sm:$0xff] %vm884_vm8, %v879_v26  ;;  %v1011_v27 = vpack.c.bf16 %v1008_v25, %v1008_v25  ;;  %v1623_v25 = vld [vmem:[%s1232_s2] ss:$0 sm:$0xff] }
 0xa21   : > { %1806 = vmatmul.mubr.msk.bf16.vlgmr.msra.gmra.mxu1 %vm200_vm5, %v1011_v27 }
 0xa22   : > { %1819 = vmatprep.mubr.msk.bf16.mxu1 %vm2018_vm3, %v2017_v13  ;;  %1816 = vmatpush3.bf16.msra.mxu1 %v1899_v30  ;;  %v1908_v30 = vld [vmem:[%s2168_s22 + $0x10] sm:$0xff]  }
 0xa23   : > { %1817 = vmatprep.subr.bf16.mxu1 %v2017_v13 }
 0xa24   : > { %v1942_v21 = vpop.eup %1941 }
 0xa25   : > { %v1010_v28 = vmul.f32 %v1942_v21, %v1938_v16 }
 0xa26   : > { %1818 = vmatpush3.bf16.msra.mxu1 %v1900_v31  ;;  %v1909_v31 = vld [vmem:[%s2168_s22 + $0x8] sm:$0xff]  }
 0xa27   : > { %v1012_v29 = vpack.c.bf16 %v1010_v28, %v1010_v28  ;;  %1831 = vmatprep.subr.bf16.mxu1 %v2017_v13 }
 0xa29   : > { %1812 = vmatmul.mubr.msk.bf16.vlgmr.msra.gmra.mxu0 %vm200_vm5, %v1012_v29 }
 0xa2a   : > { %1827 = vmatprep.mubr.msk.bf16.mxu0 %vm2018_vm3, %v2017_v13  ;;  %1824 = vmatpush3.bf16.msra.mxu0 %v1901_v45 }
 0xa2b   : > { %1825 = vmatprep.subr.bf16.mxu0 %v2017_v13 }
 0xa2e   : > { %1826 = vmatpush3.bf16.msra.mxu0 %v1902_v46 }
 0xae1   : > { %v1055_v32 = vpop.f32.mrf.mxu1 }
 0xae2   : > { %1111 = vrot.lane.b32.xlu0 %v1055_v32, %s2032_s21  ;;  %v1910_v32 = vld [vmem:[%s2168_s22] sm:$0xff]   ;;  %s1342_s22 = scalar_lea.vmem %s2406_s10, %s2013_s0  ;;  %s121_s0 = sadd.s32 1, %s2013_s0  }
 0xae3   : > { %v1807_v33 = vpop.f32.mrf.mxu1  ;;  %p118_p0 = scmp.ge.s32.totalorder %s121_s0, 2  }
 0xae4   : > { %v1625_v33 = vld [vmem:[%s1250_s27] ss:$0 sm:$0xff]  ;;  %s2033_s19 = smov (%p118_p0), [#allocation3]  }
 0xae5   : > { %v1058_v34 = vpop.f32.mrf.mxu1  ;;  %s1538_s23 = sshll.u32 (%p118_p0), %s2033_s19, 4  ;;  %s1539_s23 = int_to_ptr.vmem [resolvable:$true] %s1538_s23 }
 0xae6   :  { %s1947_s24 = scalar_lea.vmem (%p118_p0), %s1539_s23, 256  ;;  %p1952_p2 = scmp.lt.s32.totalorder (%p118_p0), %s1539_s23, %s1539_s23 }
 0xae7   : > { %v1808_v35 = vpop.f32.mrf.mxu1  ;;  %p1948_p1 = scmp.ne.s32.totalorder (%p118_p0), %s1539_s23, %s1947_s24  ;;  %p1953_p3 = scmp.lt.s32.totalorder (%p118_p0), %s1947_s24, %s1947_s24 }
 0xae9   : > { %v1103_v36 = vpop.f32.mrf.mxu0  ;;  %p1954_p4 = por (%p118_p0), %p1953_p3, %p1952_p2 }
 0xaea   : > { %1113 = vrot.lane.b32.xlu1 %v1103_v36, %s2032_s21 }
 0xaeb   : > { %v1813_v37 = vpop.f32.mrf.mxu0  ;;  %p1955_p5 = pnand (%p118_p0), %p1954_p4, %p1948_p1 }
 0xaed   : > { %v1106_v38 = vpop.f32.mrf.mxu0 }
 0xaef   : > { %v1814_v39 = vpop.f32.mrf.mxu0 }
 0xb54   : > { %v1112_v40 = vpop.permute.xlu0 %1111 }
 0xb55   : > { %1118 = vst.msk [vmem:[#allocation2] sm:$0xff] %vm1117_vm9, %v1112_v40 }
 0xb5c   : > { %v1114_v41 = vpop.permute.xlu1 %1113  ;;  %v1120_v42 = vld [vmem:[#allocation2] sm:$0xff] }
 0xb5d   : > { %1119 = vst.msk [vmem:[#allocation2 + $0x8] sm:$0xff] %vm1117_vm9, %v1114_v41 }
 0xb64   : > { %v1121_v43 = vld [vmem:[#allocation2 + $0x8] sm:$0xff] }
 0xb65   : > { %v1648_v44 = vpack.c.bf16 %v1121_v43, %v1120_v42 }
 0xb67   : > { %1820 = vmatmul.mubr.msk.bf16.vlgmr.msra.gmra.mxu1 %vm150_vm4, %v1648_v44 }
 0xb68   : > { %1847 = vmatprep.mubr.msk.bf16.mxu1 %vm2018_vm3, %v2017_v13  ;;  %1832 = vmatpush3.bf16.msra.mxu1 %v1903_v47 }
 0xb69   : > { %1833 = vmatprep.subr.bf16.mxu1 %v2017_v13 }
 0xb6c   : > { %1834 = vmatpush3.bf16.msra.mxu1 %v1904_v48 }
 0xb6d   : > { %1835 = vmatprep.subr.bf16.mxu1 %v2017_v13 }
 0xb70   : > { %1836 = vmatpush3.bf16.msra.mxu1 %v1905_v49 }
 0xb71   : > { %1837 = vmatprep.subr.bf16.mxu1 %v2017_v13 }
 0xb74   : > { %1838 = vmatpush3.bf16.msra.mxu1 %v1906_v50 }
 0xb75   : > { %1839 = vmatprep.subr.bf16.mxu1 %v2017_v13 }
 0xb78   : > { %1840 = vmatpush3.bf16.msra.mxu1 %v1907_v51 }
 0xb79   : > { %1841 = vmatprep.subr.bf16.mxu1 %v2017_v13 }
 0xb7c   : > { %1842 = vmatpush3.bf16.msra.mxu1 %v1908_v30 }
 0xb7d   : > { %1843 = vmatprep.subr.bf16.mxu1 %v2017_v13 }
 0xb80   : > { %1844 = vmatpush3.bf16.msra.mxu1 %v1909_v31 }
 0xb81   : > { %1845 = vmatprep.subr.bf16.mxu1 %v2017_v13  ;;  %v1632_v13 = vld [vmem:[%s1342_s22] ss:$0 sm:$0xff] }
 0xb84   : > { %1846 = vmatpush3.bf16.msra.mxu1 %v1910_v32 }
 0xc27   : > { %v1184_v52 = vpop.f32.mrf.mxu1 }
 0xc28   : > { %v1191_v54 = vadd.f32 %v2009_v8, %v1184_v52 }
 0xc29   : > { %v1821_v53 = vpop.f32.mrf.mxu1 }
 0xc2a   : > { %v1193_v59 = vsel %vm150_vm4, %v1191_v54, 0.0 }
 0xc2b   : > { %v1187_v55 = vpop.f32.mrf.mxu1 }
 0xc2c   : > { %v1192_v57 = vadd.f32 %v2005_v11, %v1187_v55 }
 0xc2d   : > { %v1822_v58 = vpop.f32.mrf.mxu1 }
 0xc2e   : > { %v1194_v61 = vsel %vm150_vm4, %v1192_v57, 0.0 }
 0xc2f   : > { %v1195_v62 = vadd.f32 %v1194_v61, %v1193_v59 }
 0xc31   : > { %v1196_v63 = vrot.slane %v1195_v62, 4 }
 0xc33   : > { %v1197_v0 = vadd.f32 %v1196_v63, %v1195_v62 }
 0xc35   : > { %v1198_v1 = vrot.slane %v1197_v0, 2 }
 0xc37   : > { %v1199_v2 = vadd.f32 %v1198_v1, %v1197_v0 }
 0xc39   : > { %v1200_v3 = vrot.slane %v1199_v2, 1 }
 0xc3b   : > { %v1201_v4 = vadd.f32 %v1200_v3, %v1199_v2 }
 0xc3d   : > { %v1203_v5 = vmul.f32 0.0625, %v1201_v4 }
 0xc3f   : > { %v1204_v6 = vsub.f32 %v1191_v54, %v1203_v5  ;;  %v1205_v7 = vsub.f32 %v1192_v57, %v1203_v5 }
 0xc41   : > { %v1206_v8 = vmul.f32 %v1204_v6, %v1204_v6  ;;  %v1207_v9 = vmul.f32 %v1205_v7, %v1205_v7 }
 0xc43   : > { %v1208_v11 = vsel %vm150_vm4, %v1206_v8, 0.0  ;;  %v1209_v10 = vsel %vm150_vm4, %v1207_v9, 0.0 }
 0xc44   : > { %v1210_v12 = vadd.f32 %v1209_v10, %v1208_v11 }
 0xc46   : > { %v1211_v18 = vrot.slane %v1210_v12, 4 }
 0xc48   : > { %v1212_v56 = vadd.f32 %v1211_v18, %v1210_v12 }
 0xc4a   : > { %v1213_v60 = vrot.slane %v1212_v56, 2 }
 0xc4c   : > { %v1214_v14 = vadd.f32 %v1213_v60, %v1212_v56  ;;  %v1642_v60 = vld [vmem:[%s1475_s18] ss:$0 sm:$0xff] }
 0xc4e   : > { %v1215_v15 = vrot.slane %v1214_v14, 1 }
 0xc50   : > { %v1216_v16 = vadd.f32 %v1215_v15, %v1214_v14 }
 0xc52   : > { %v1217_v17 = vmul.f32 0.0625, %v1216_v16  ;;  %v1643_v16 = vld [vmem:[%s1485_s16] ss:$0 sm:$0xff] }
 0xc54   : > { %v1218_v19 = vadd.f32 1e-05, %v1217_v17 }
 0xc56   : > { %1943 = vrsqrt.f32 %v1218_v19 }
 0xc63   : > { %v1944_v20 = vpop.eup %1943 }
 0xc64   : > { %v1220_v23 = vmul.f32 %v1944_v20, %v1204_v6  ;;  %v1221_v24 = vmul.f32 %v1944_v20, %v1205_v7 }
 0xc66   : > { %v1230_v26 = vmul.f32 %v1622_v22, %v1220_v23  ;;  %v1231_v27 = vmul.f32 %v1622_v22, %v1221_v24 }
 0xc68   : > { %v1240_v21 = vadd.f32 %v1623_v25, %v1230_v26  ;;  %v1241_v28 = vadd.f32 %v1623_v25, %v1231_v27  ;;  %v1522_v27 = vlaneseq (%p118_p0) }
 0xc6a   : > { %v1650_v29 = vpack.c.bf16 %v1241_v28, %v1240_v21 }
 0xc6c   : > { %1828 = vmatmul.mubr.msk.bf16.vlgmr.msra.gmra.mxu0 %vm150_vm4, %v1650_v29  ;;  %v1523_v29 = vshrl.u32 (%p118_p0), %v1522_v27, 7 }
 0xd2c   : > { %v1312_v34 = vpop.f32.mrf.mxu0 }
 0xd2d   : > { %v1313_v36 = vadd.f32 %v1625_v33, %v1312_v34 }
 0xd2e   : > { %v1829_v35 = vpop.f32.mrf.mxu0 }
 0xd2f   : > { %v1319_v40 = vmax.f32 %v1313_v36, 0.0 }
 0xd30   : > { %v1315_v37 = vpop.f32.mrf.mxu0 }
 0xd31   : > { %v1316_v38 = vadd.f32 %v1625_v33, %v1315_v37 }
 0xd32   : > { %v1830_v39 = vpop.f32.mrf.mxu0 }
 0xd33   : > { %v1320_v41 = vmax.f32 %v1316_v38, 0.0 }
 0xd35   : > { %v1652_v42 = vpack.c.bf16 %v1320_v41, %v1319_v40 }
 0xd37   : > { %1848 = vmatmul.mubr.bf16.vlgmr.msra.gmra.mxu1 %v1652_v42 }
 0xdf7   : > { %v1438_v43 = vpop.f32.mrf.mxu1 }
 0xdf8   : > { %v1439_v44 = vadd.f32 %v1632_v13, %v1438_v43 }
 0xdf9   : > { %v1849_v45 = vpop.f32.mrf.mxu1 }
 0xdfa   : > { %v1445_v47 = vadd.f32 %v1439_v44, %v1240_v21 }
 0xdfb   : > { %v1441_v46 = vpop.f32.mrf.mxu1 }
 0xdfc   : > { %v1442_v48 = vadd.f32 %v1632_v13, %v1441_v46  ;;  %v1447_v51 = vsel %vm150_vm4, %v1445_v47, 0.0 }
 0xdfd   : > { %v1850_v49 = vpop.f32.mrf.mxu1 }
 0xdfe   : > { %v1446_v50 = vadd.f32 %v1442_v48, %v1241_v28 }
 0xe00   : > { %v1448_v52 = vsel %vm150_vm4, %v1446_v50, 0.0 }
 0xe01   : > { %v1449_v53 = vadd.f32 %v1448_v52, %v1447_v51 }
 0xe03   : > { %v1450_v54 = vrot.slane %v1449_v53, 4 }
 0xe05   : > { %v1451_v55 = vadd.f32 %v1450_v54, %v1449_v53 }
 0xe07   : > { %v1452_v57 = vrot.slane %v1451_v55, 2 }
 0xe09   : > { %v1453_v58 = vadd.f32 %v1452_v57, %v1451_v55 }
 0xe0b   : > { %v1454_v59 = vrot.slane %v1453_v58, 1 }
 0xe0d   : > { %v1455_v61 = vadd.f32 %v1454_v59, %v1453_v58 }
 0xe0f   : > { %v1456_v62 = vmul.f32 0.0625, %v1455_v61 }
 0xe11   : > { %v1457_v63 = vsub.f32 %v1445_v47, %v1456_v62  ;;  %v1458_v0 = vsub.f32 %v1446_v50, %v1456_v62 }
 0xe13   : > { %v1459_v1 = vmul.f32 %v1457_v63, %v1457_v63  ;;  %v1460_v2 = vmul.f32 %v1458_v0, %v1458_v0 }
 0xe15   : > { %v1461_v3 = vsel %vm150_vm4, %v1459_v1, 0.0  ;;  %v1462_v4 = vsel %vm150_vm4, %v1460_v2, 0.0 }
 0xe16   : > { %v1463_v5 = vadd.f32 %v1462_v4, %v1461_v3 }
 0xe18   : > { %v1464_v6 = vrot.slane %v1463_v5, 4 }
 0xe1a   : > { %v1465_v7 = vadd.f32 %v1464_v6, %v1463_v5 }
 0xe1c   : > { %v1466_v8 = vrot.slane %v1465_v7, 2 }
 0xe1e   : > { %v1467_v9 = vadd.f32 %v1466_v8, %v1465_v7 }
 0xe20   : > { %v1468_v11 = vrot.slane %v1467_v9, 1 }
 0xe22   : > { %v1469_v10 = vadd.f32 %v1468_v11, %v1467_v9 }
 0xe24   : > { %v1470_v12 = vmul.f32 0.0625, %v1469_v10 }
 0xe26   : > { %v1471_v18 = vadd.f32 1e-05, %v1470_v12 }
 0xe28   : > { %1945 = vrsqrt.f32 %v1471_v18 }
 0xe35   : > { %v1946_v56 = vpop.eup %1945 }
 0xe36   : > { %v1473_v14 = vmul.f32 %v1946_v56, %v1457_v63  ;;  %v1474_v15 = vmul.f32 %v1946_v56, %v1458_v0 }
 0xe38   : > { %v1483_v17 = vmul.f32 %v1642_v60, %v1473_v14  ;;  %v1484_v19 = vmul.f32 %v1642_v60, %v1474_v15  ;;  %120 = sbr.rel (!%p118_p0) target bundleno = 205 (0xcd), region = 105 }
 0xe3a   : > { %v1493_v20 = vadd.f32 %v1643_v16, %v1483_v17   ;;  %v1494_v22 = vadd.f32 %v1643_v16, %v1484_v19  }
 0xe3c   : > { %v2412_v11 = vmov %v1494_v22  ;;  %v2413_v8 = vmov %v1493_v20  ;;  %1496 = vst.msk [vmem:[#allocation3] sm:$0xff] (%p118_p0), %vm150_vm4, %v1493_v20  ;;  %1497 = vst.msk [vmem:[#allocation3 + $0x8] sm:$0xff] (%p118_p0), %vm150_vm4, %v1494_v22  ;;  %v1498_v23 = vsel (%p118_p0), %vm150_vm4, %v1493_v20, 0.0  ;;  %v1505_v24 = vsel (%p118_p0), %vm150_vm4, %v1494_v22, 0.0 }
 0xe3d   :  { %v1499_v25 = vrot.slane %v1498_v23, 4  ;;  %v1506_v26 = vrot.slane %v1505_v24, 4 }
 0xe3f   :  { %v1500_v21 = vadd.f32 %v1499_v25, %v1498_v23  ;;  %v1507_v28 = vadd.f32 %v1506_v26, %v1505_v24 }
 0xe40   :  { %1958 = shalt.err (!%p1955_p5)
}
 0xe41   :  { %s2034_s3 = smov 128   ;;  %s2035_s4 = smov 8   ;;  %v1501_v30 = vrot.slane %v1500_v21, 2  ;;  %v1508_v31 = vrot.slane %v1507_v28, 2  ;;  %v1524_v32 = vsub.s32 0, %v1523_v29  ;;  %vm1530_vm10 = vcmask 256000  }
 0xe42   :  { %1544 = dma.vmem_to_hbm [thread:$0]  %s1539_s23, 256, %s2409_s13, [#allocation4], %s2034_s3, %s2034_s3, %s2035_s4   ;;  %vm1517_vm11 = vcmask 1041409   ;;  %vm1520_vm12 = vcmask 254976  }
 0xe43   :  { %v1502_v33 = vadd.f32 %v1501_v30, %v1500_v21  ;;  %v1509_v34 = vadd.f32 %v1508_v31, %v1507_v28  ;;  %v1525_v35 = vrot.slane %v1493_v20, %v1524_v32  ;;  %v1529_v36 = vrot.slane %v1494_v22, %v1524_v32  ;;  %s2036_s11 = smov [#allocation5]  }
 0xe44   :  { %s1551_s12 = sshll.u32 %s2036_s11, 4  ;;  %s1552_s12 = int_to_ptr.vmem [resolvable:$true] %s1551_s12 }
 0xe45   :  { %v1503_v37 = vrot.slane %v1502_v33, 1  ;;  %v1510_v38 = vrot.slane %v1509_v34, 1  ;;  %1531 = vst.msk [vmem:[%s2411_s15] sm:$0x7] %vm1530_vm10, %v1525_v35  ;;  %1532 = vst.msk [vmem:[%s2411_s15 + $0x4] sm:$0x7] %vm1530_vm10, %v1529_v36  ;;  %p1972_p7 = scmp.lt.s32.totalorder %s1552_s12, %s1552_s12 }
 0xe46   :  { %s1967_s13 = scalar_lea.vmem %s1552_s12, 32 }
 0xe47   :  { %v1504_v39 = vadd.f32 %v1503_v37, %v1502_v33  ;;  %v1511_v40 = vadd.f32 %v1510_v38, %v1509_v34  ;;  %p1968_p6 = scmp.ne.s32.totalorder %s1552_s12, %s1967_s13  ;;  %p1973_p8 = scmp.lt.s32.totalorder %s1967_s13, %s1967_s13 }
 0xe49   :  { %v1513_v41 = vmul.f32 0.125, %v1504_v39  ;;  %v1514_v42 = vmul.f32 0.125, %v1511_v40  ;;  %p1974_p9 = por %p1973_p8, %p1972_p7 }
 0xe4b   :  { %v1518_v13 = vsel %vm1517_vm11, %v1514_v42, %v1513_v41  ;;  %p1975_p10 = pnand %p1974_p9, %p1968_p6 }
 0xe4c   :  { %1521 = vst.msk [vmem:[#allocation5] sm:$0x3] %vm1520_vm12, %v1518_v13 }
 0xe4d   :  { %1978 = shalt.err (!%p1975_p10)
}
 0xe4e   :  { %1554 = dma.vmem_to_hbm [thread:$0]  %s1552_s12, 32, %s2410_s14, [#allocation6]  }
 0xe4f   :  { %1999 = dma.done.wait [#allocation4], 256  }
 0xe50   :  { %2000 = vsyncadd [#allocation4], 4294967040 }
 0xe51   :  { %2001 = dma.done.wait [#allocation6], 32  }
 0xe52   :  { %2002 = vsyncadd [#allocation6], 4294967264 }
 0xe53   :  { %1565 = vsyncpa [#allocation4], 1 }
 0xe54   :  { %1566 = vsyncpa [#allocation6], 1 }

</bundles_post_ra>
